<compile_context>
chip_gen: v5e
topology: v5e:2x2
jax: 0.10.0
libtpu: 0.0.40
codegen_flags: <defaults>
</compile_context>

<pallas_src>
import functools

import jax
import jax.numpy as jnp
from jax.experimental import pallas as pl
from jax.experimental.pallas import tpu as pltpu

_TARGET_ROWS = 2048                                  # cap on M = Bt*L per grid step
_MATMUL_PRECISION = jax.lax.Precision.HIGHEST        # f32 fidelity with PyTorch


def _pick_batch_tile(batch, seq_len, target_rows=_TARGET_ROWS):
    """Largest divisor Bt of `batch` with Bt*seq_len <= target_rows, preferring
    at least 2 grid steps (v7x megacore). Bounded fallback of Bt = 1."""
    divisors = [d for d in range(1, batch + 1) if batch % d == 0]
    under = [d for d in divisors if d * seq_len <= target_rows]
    if not under:
        # Even a single sequence exceeds the row budget; keep the block bounded.
        # TODO(synk): tile L with a (K-1)//2 halo for very long sequences.
        return 1
    best = max(under)
    if best == batch and batch > 1:
        # Prefer >= 2 grid steps so ("parallel",) can use both v7x TensorCores.
        smaller = [d for d in under if d < batch]
        if smaller:
            best = max(smaller)
    return best


def _lite_tcn_kernel(x_ref, w1_ref, b1_ref, w2_ref, b2_ref, w3_ref, b3_ref,
                     o_ref, *, L, K, H):
    """One batch-block per grid step, channels-first / lane-dense.

    x_ref : (1, Cin, M)  inputs; M = Bt*L flattened (batch, time) on lanes
    w1_ref: (K*H, Cin)   conv1 weights, taps fused along the output (sublane) dim
    b1_ref: (H, 1)
    w2_ref: (K*H, H)     conv2 weights, taps fused along the output (sublane) dim
    b2_ref: (H, 1)
    w3_ref: (1, H)       conv3 (1x1) weights as a row vector
    b3_ref: (1, 1)
    o_ref : (1, 1, M)    lane-dense output row
    """
    x = x_ref[0]                                          # (Cin, M) f32
    M = x.shape[-1]
    pad = (K - 1) // 2

    # Per-column position inside its sequence; boundary masks hoisted and shared
    # by both conv layers (same offsets, same positions).
    pos = jax.lax.broadcasted_iota(jnp.int32, (1, M), 1) % L          # (1, M)
    masks = {}
    for dk in range(K):
        off = dk - pad
        if off != 0:
            masks[off] = jnp.logical_and(pos + off >= 0, pos + off <= L - 1)

    def conv_same(inp, w_ref, b_ref):
        # Single MXU pass: rows [dk*H:(dk+1)*H) of z hold tap dk's (H, M) output.
        z = jnp.dot(w_ref[...], inp, precision=_MATMUL_PRECISION,
                    preferred_element_type=jnp.float32)               # (K*H, M)
        # Centre tap needs no shift; fold the bias in here (saves a VPU add).
        acc = z[pad * H:(pad + 1) * H, :] + b_ref[...]
        for dk in range(K):
            off = dk - pad
            if off == 0:
                continue
            tap = z[dk * H:(dk + 1) * H, :]                 # sublane-aligned slice
            # out[:, t] = tap[:, t + off] inside each sequence, 0 at the 'same'
            # padding boundary (also kills cross-sequence wrap from the roll).
            shifted = pltpu.roll(tap, shift=(-off) % M, axis=1)
            acc = acc + jnp.where(masks[off], shifted, 0.0)
        return acc

    h1 = jnp.maximum(conv_same(x, w1_ref, b1_ref), 0.0)     # conv1 + ReLU
    # dropout -> identity (eval mode)
    h2 = jnp.maximum(conv_same(h1, w2_ref, b2_ref), 0.0)    # conv2 + ReLU
    # dropout -> identity (eval mode)

    # conv3 (1x1): (1, H) @ (H, M) -> lane-dense (1, M) output row.
    y = jnp.dot(w3_ref[...], h2, precision=_MATMUL_PRECISION,
                preferred_element_type=jnp.float32)
    o_ref[0] = y + b3_ref[...]


@jax.jit
def lite_tcn_forward(x, features, w1t, b1, w2t, b2, w3t, b3):
    """x: (B, L, input_size); features: (B, L, feature_size) or None.

    Weight layout (tap-major, as exported from the PyTorch module):
      w1t[k, i, o] = conv1.weight[o, i, k]   (K, Cin, H)
      w2t[k, i, o] = conv2.weight[o, i, k]   (K, H, H)
      w3t[i, o]    = conv3.weight[o, i, 0]   (H, 1)
    """
    if features is not None:
        x = jnp.concatenate([x, features], axis=-1)
    x = x.astype(jnp.float32)
    B, L, Cin = x.shape
    K, _, H = w1t.shape
    assert K % 2 == 1, "kernel_size must be odd for 'same' padding semantics"

    Bt = _pick_batch_tile(B, L)
    nb = B // Bt
    M = Bt * L

    # Channels-first, tap-fused weights (done once, outside the kernel): row block
    # dk of w*f is tap dk's (H, C) matrix, so  z = w*f @ x  gives all taps at once.
    w1f = jnp.transpose(w1t, (0, 2, 1)).reshape(K * H, Cin).astype(jnp.float32)
    w2f = jnp.transpose(w2t, (0, 2, 1)).reshape(K * H, H).astype(jnp.float32)
    w3r = w3t.reshape(1, H).astype(jnp.float32)
    b1r = b1.reshape(H, 1).astype(jnp.float32)
    b2r = b2.reshape(H, 1).astype(jnp.float32)
    b3r = b3.reshape(1, 1).astype(jnp.float32)

    # (B, L, C) -> (nb, C, Bt*L): channels on sublanes, (batch, time) flat on lanes.
    x_blk = (jnp.transpose(x, (0, 2, 1))          # (B, C, L)
             .reshape(nb, Bt, Cin, L)
             .transpose(0, 2, 1, 3)
             .reshape(nb, Cin, M))

    kernel = functools.partial(_lite_tcn_kernel, L=L, K=K, H=H)

    flops = 2 * B * L * (Cin * K * H + H * K * H + H)
    bytes_accessed = 4 * (B * L * Cin + B * L
                          + w1f.size + w2f.size + w3r.size + 2 * H + 1)
    cost = pl.CostEstimate(flops=flops, transcendentals=0,
                           bytes_accessed=bytes_accessed)

    out = pl.pallas_call(
        kernel,
        out_shape=jax.ShapeDtypeStruct((nb, 1, M), jnp.float32),
        grid_spec=pltpu.PrefetchScalarGridSpec(
            num_scalar_prefetch=0,
            grid=(nb,),
            in_specs=[
                pl.BlockSpec((1, Cin, M), lambda b: (b, 0, 0)),
                pl.BlockSpec((K * H, Cin), lambda b: (0, 0)),
                pl.BlockSpec((H, 1), lambda b: (0, 0)),
                pl.BlockSpec((K * H, H), lambda b: (0, 0)),
                pl.BlockSpec((H, 1), lambda b: (0, 0)),
                pl.BlockSpec((1, H), lambda b: (0, 0)),
                pl.BlockSpec((1, 1), lambda b: (0, 0)),
            ],
            out_specs=pl.BlockSpec((1, 1, M), lambda b: (b, 0, 0)),
        ),
        compiler_params=pltpu.CompilerParams(
            dimension_semantics=("parallel",),        # batch blocks across v7x TCs
            vmem_limit_bytes=32 * 1024 * 1024),
        cost_estimate=cost,
    )(x_blk, w1f, b1r, w2f, b2r, w3r, b3r)

    # (nb, 1, Bt*L) rows are exactly (B, L) in row-major order.
    return out.reshape(B, L, 1)


def _reference_forward(x, features, w1t, b1, w2t, b2, w3t, b3):
    """Pure-JAX reference with identical semantics (for sanity check)."""
    if features is not None:
        x = jnp.concatenate([x, features], axis=-1)
    x = x.astype(jnp.float32)
    B, L, Cin = x.shape
    K, _, H = w1t.shape
    pad = (K - 1) // 2
    prec = jax.lax.Precision.HIGHEST

    def conv_same(inp, wt, bias):  # inp (B, L, C), wt (K, C, O)
        ip = jnp.pad(inp, ((0, 0), (pad, pad), (0, 0)))
        out = sum(jnp.einsum('blc,co->blo', ip[:, dk:dk + L], wt[dk],
                             precision=prec)
                  for dk in range(K))
        return out + bias

    h1 = jax.nn.relu(conv_same(x, w1t, b1))
    h2 = jax.nn.relu(conv_same(h1, w2t, b2))
    return jnp.einsum('blh,ho->blo', h2, w3t, precision=prec) + b3


if __name__ == "__main__":
    # Small, deterministic config consistent with LiteTCN:
    # input_size=1, feature_size=3 -> total_input=4, hidden_size=32, kernel_size=3
    B, L = 2, 16
    input_size, feature_size = 1, 3
    Cin = input_size + feature_size
    H, K = 32, 3

    key = jax.random.PRNGKey(0)
    keys = jax.random.split(key, 8)

    x = jax.random.normal(keys[0], (B, L, input_size), jnp.float32)
    feats = jax.random.normal(keys[1], (B, L, feature_size), jnp.float32)

    # Parameters (tap-major layout: w*t[k, in, out] = torch_weight[out, in, k]).
    w1t = 0.1 * jax.random.normal(keys[2], (K, Cin, H), jnp.float32)
    b1 = 0.1 * jax.random.normal(keys[3], (H,), jnp.float32)
    w2t = 0.1 * jax.random.normal(keys[4], (K, H, H), jnp.float32)
    b2 = 0.1 * jax.random.normal(keys[5], (H,), jnp.float32)
    w3t = 0.1 * jax.random.normal(keys[6], (H, 1), jnp.float32)
    b3 = 0.1 * jax.random.normal(keys[7], (1,), jnp.float32)

    out = lite_tcn_forward(x, feats, w1t, b1, w2t, b2, w3t, b3)
    out = jax.block_until_ready(out)

    ref = _reference_forward(x, feats, w1t, b1, w2t, b2, w3t, b3)
    assert out.shape == (B, L, 1), out.shape
    err = float(jnp.max(jnp.abs(out - ref)))
    assert jnp.allclose(out, ref, atol=1e-4, rtol=1e-4), err

    print("KERNEL_OK")
</pallas_src>

<mosaic_0001>
module attributes {stable_mosaic.version = 11 : i64} {
  func.func @_lite_tcn_kernel(%arg0: i32, %arg1: memref<1x4x16xf32, #tpu.memory_space<vmem>>, %arg2: memref<96x4xf32, #tpu.memory_space<vmem>>, %arg3: memref<32x1xf32, #tpu.memory_space<vmem>>, %arg4: memref<96x32xf32, #tpu.memory_space<vmem>>, %arg5: memref<32x1xf32, #tpu.memory_space<vmem>>, %arg6: memref<1x32xf32, #tpu.memory_space<vmem>>, %arg7: memref<1x1xf32, #tpu.memory_space<vmem>>, %arg8: memref<1x1x16xf32, #tpu.memory_space<vmem>>) attributes {dimension_semantics = [#tpu.dimension_semantics<parallel>], iteration_bounds = array<i64: 2>, scalar_prefetch = 0 : i64, scratch_operands = 0 : i64, tpu.core_type = #tpu.core_type<tc>, window_params = [{transform_indices = @transform_0, window_bounds = array<i64: 1, 4, 16>}, {pipeline_mode = #tpu.pipeline_mode<synchronous>, transform_indices = @transform_1, window_bounds = array<i64: 96, 4>}, {pipeline_mode = #tpu.pipeline_mode<synchronous>, transform_indices = @transform_2, window_bounds = array<i64: 32, 1>}, {pipeline_mode = #tpu.pipeline_mode<synchronous>, transform_indices = @transform_3, window_bounds = array<i64: 96, 32>}, {pipeline_mode = #tpu.pipeline_mode<synchronous>, transform_indices = @transform_4, window_bounds = array<i64: 32, 1>}, {pipeline_mode = #tpu.pipeline_mode<synchronous>, transform_indices = @transform_5, window_bounds = array<i64: 1, 32>}, {pipeline_mode = #tpu.pipeline_mode<synchronous>, transform_indices = @transform_6, window_bounds = array<i64: 1, 1>}, {transform_indices = @transform_7, window_bounds = array<i64: 1, 1, 16>}]} {
    %c0 = arith.constant 0 : index
    %c0_0 = arith.constant 0 : index
    %c0_1 = arith.constant 0 : index
    %0 = vector.load %arg1[%c0, %c0_0, %c0_1] : memref<1x4x16xf32, #tpu.memory_space<vmem>>, vector<1x4x16xf32>
    %1 = vector.shape_cast %0 : vector<1x4x16xf32> to vector<4x16xf32>
    %2 = tpu.iota {dimensions = array<i32: 1>} : vector<1x16xi32>
    %c16_i32 = arith.constant 16 : i32
    %c0_i32 = arith.constant 0 : i32
    %3 = arith.cmpi eq, %c16_i32, %c0_i32 : i32
    %c1_i32 = arith.constant 1 : i32
    %4 = arith.select %3, %c1_i32, %c16_i32 : i32
    %5 = vector.broadcast %4 : i32 to vector<1x16xi32>
    %6 = arith.remsi %2, %5 : vector<1x16xi32>
    %c0_i32_2 = arith.constant 0 : i32
    %7 = vector.broadcast %c0_i32_2 : i32 to vector<1x16xi32>
    %8 = arith.cmpi ne, %6, %7 : vector<1x16xi32>
    %c0_i32_3 = arith.constant 0 : i32
    %9 = vector.broadcast %c0_i32_3 : i32 to vector<1x16xi32>
    %10 = arith.cmpi slt, %6, %9 : vector<1x16xi32>
    %c0_i32_4 = arith.constant 0 : i32
    %11 = arith.cmpi slt, %4, %c0_i32_4 : i32
    %12 = vector.broadcast %11 : i1 to vector<1x16xi1>
    %13 = vector.broadcast %12 : vector<1x16xi1> to vector<1x16xi1>
    %14 = arith.xori %10, %13 : vector<1x16xi1>
    %15 = arith.andi %14, %8 : vector<1x16xi1>
    %16 = vector.broadcast %4 : i32 to vector<1x16xi32>
    %17 = arith.addi %6, %16 : vector<1x16xi32>
    %18 = arith.select %15, %17, %6 : vector<1x16xi1>, vector<1x16xi32>
    %c-1_i32 = arith.constant -1 : i32
    %19 = vector.broadcast %c-1_i32 : i32 to vector<1x16xi32>
    %20 = arith.addi %18, %19 : vector<1x16xi32>
    %c0_i32_5 = arith.constant 0 : i32
    %21 = vector.broadcast %c0_i32_5 : i32 to vector<1x16xi32>
    %22 = arith.cmpi sge, %20, %21 : vector<1x16xi32>
    %c-1_i32_6 = arith.constant -1 : i32
    %23 = vector.broadcast %c-1_i32_6 : i32 to vector<1x16xi32>
    %24 = arith.addi %18, %23 : vector<1x16xi32>
    %c15_i32 = arith.constant 15 : i32
    %25 = vector.broadcast %c15_i32 : i32 to vector<1x16xi32>
    %26 = arith.cmpi sle, %24, %25 : vector<1x16xi32>
    %27 = arith.andi %22, %26 : vector<1x16xi1>
    %c1_i32_7 = arith.constant 1 : i32
    %28 = vector.broadcast %c1_i32_7 : i32 to vector<1x16xi32>
    %29 = arith.addi %18, %28 : vector<1x16xi32>
    %c0_i32_8 = arith.constant 0 : i32
    %30 = vector.broadcast %c0_i32_8 : i32 to vector<1x16xi32>
    %31 = arith.cmpi sge, %29, %30 : vector<1x16xi32>
    %c1_i32_9 = arith.constant 1 : i32
    %32 = vector.broadcast %c1_i32_9 : i32 to vector<1x16xi32>
    %33 = arith.addi %18, %32 : vector<1x16xi32>
    %c15_i32_10 = arith.constant 15 : i32
    %34 = vector.broadcast %c15_i32_10 : i32 to vector<1x16xi32>
    %35 = arith.cmpi sle, %33, %34 : vector<1x16xi32>
    %36 = arith.andi %31, %35 : vector<1x16xi1>
    %c0_11 = arith.constant 0 : index
    %c0_12 = arith.constant 0 : index
    %37 = vector.load %arg2[%c0_11, %c0_12] : memref<96x4xf32, #tpu.memory_space<vmem>>, vector<96x4xf32>
    %cst = arith.constant dense<0.000000e+00> : vector<96x16xf32>
    %38 = tpu.matmul %37, %1, %cst {dimension_numbers = #tpu.dot_dimension_numbers<[1], [0], [0], [1], [0, 0, 1, 1], [], []>, precision = #tpu.contract_precision<fp32>} : vector<96x4xf32>, vector<4x16xf32>, vector<96x16xf32> -> vector<96x16xf32>
    %39 = vector.extract_strided_slice %38 {offsets = [32, 0], sizes = [32, 16], strides = [1, 1]} : vector<96x16xf32> to vector<32x16xf32>
    %c0_13 = arith.constant 0 : index
    %c0_14 = arith.constant 0 : index
    %40 = vector.load %arg3[%c0_13, %c0_14] : memref<32x1xf32, #tpu.memory_space<vmem>>, vector<32x1xf32>
    %41 = vector.broadcast %40 : vector<32x1xf32> to vector<32x16xf32>
    %42 = arith.addf %39, %41 : vector<32x16xf32>
    %43 = vector.extract_strided_slice %38 {offsets = [0, 0], sizes = [32, 16], strides = [1, 1]} : vector<96x16xf32> to vector<32x16xf32>
    %c1_i32_15 = arith.constant 1 : i32
    %44 = tpu.dynamic_rotate %43 by %c1_i32_15 dim 1 : vector<32x16xf32>, i32 -> vector<32x16xf32>
    %cst_16 = arith.constant 0.000000e+00 : f32
    %45 = vector.shape_cast %27 : vector<1x16xi1> to vector<1x16xi1>
    %46 = vector.broadcast %45 : vector<1x16xi1> to vector<32x16xi1>
    %47 = vector.broadcast %cst_16 : f32 to vector<32x16xf32>
    %48 = arith.select %46, %44, %47 : vector<32x16xi1>, vector<32x16xf32>
    %49 = arith.addf %42, %48 : vector<32x16xf32>
    %50 = vector.extract_strided_slice %38 {offsets = [64, 0], sizes = [32, 16], strides = [1, 1]} : vector<96x16xf32> to vector<32x16xf32>
    %c15_i32_17 = arith.constant 15 : i32
    %51 = tpu.dynamic_rotate %50 by %c15_i32_17 dim 1 : vector<32x16xf32>, i32 -> vector<32x16xf32>
    %cst_18 = arith.constant 0.000000e+00 : f32
    %52 = vector.shape_cast %36 : vector<1x16xi1> to vector<1x16xi1>
    %53 = vector.broadcast %52 : vector<1x16xi1> to vector<32x16xi1>
    %54 = vector.broadcast %cst_18 : f32 to vector<32x16xf32>
    %55 = arith.select %53, %51, %54 : vector<32x16xi1>, vector<32x16xf32>
    %56 = arith.addf %49, %55 : vector<32x16xf32>
    %cst_19 = arith.constant 0.000000e+00 : f32
    %57 = vector.broadcast %cst_19 : f32 to vector<32x16xf32>
    %58 = arith.maximumf %56, %57 : vector<32x16xf32>
    %c0_20 = arith.constant 0 : index
    %c0_21 = arith.constant 0 : index
    %59 = vector.load %arg4[%c0_20, %c0_21] : memref<96x32xf32, #tpu.memory_space<vmem>>, vector<96x32xf32>
    %cst_22 = arith.constant dense<0.000000e+00> : vector<96x16xf32>
    %60 = tpu.matmul %59, %58, %cst_22 {dimension_numbers = #tpu.dot_dimension_numbers<[1], [0], [0], [1], [0, 0, 1, 1], [], []>, precision = #tpu.contract_precision<fp32>} : vector<96x32xf32>, vector<32x16xf32>, vector<96x16xf32> -> vector<96x16xf32>
    %61 = vector.extract_strided_slice %60 {offsets = [32, 0], sizes = [32, 16], strides = [1, 1]} : vector<96x16xf32> to vector<32x16xf32>
    %c0_23 = arith.constant 0 : index
    %c0_24 = arith.constant 0 : index
    %62 = vector.load %arg5[%c0_23, %c0_24] : memref<32x1xf32, #tpu.memory_space<vmem>>, vector<32x1xf32>
    %63 = vector.broadcast %62 : vector<32x1xf32> to vector<32x16xf32>
    %64 = arith.addf %61, %63 : vector<32x16xf32>
    %65 = vector.extract_strided_slice %60 {offsets = [0, 0], sizes = [32, 16], strides = [1, 1]} : vector<96x16xf32> to vector<32x16xf32>
    %c1_i32_25 = arith.constant 1 : i32
    %66 = tpu.dynamic_rotate %65 by %c1_i32_25 dim 1 : vector<32x16xf32>, i32 -> vector<32x16xf32>
    %cst_26 = arith.constant 0.000000e+00 : f32
    %67 = vector.shape_cast %27 : vector<1x16xi1> to vector<1x16xi1>
    %68 = vector.broadcast %67 : vector<1x16xi1> to vector<32x16xi1>
    %69 = vector.broadcast %cst_26 : f32 to vector<32x16xf32>
    %70 = arith.select %68, %66, %69 : vector<32x16xi1>, vector<32x16xf32>
    %71 = arith.addf %64, %70 : vector<32x16xf32>
    %72 = vector.extract_strided_slice %60 {offsets = [64, 0], sizes = [32, 16], strides = [1, 1]} : vector<96x16xf32> to vector<32x16xf32>
    %c15_i32_27 = arith.constant 15 : i32
    %73 = tpu.dynamic_rotate %72 by %c15_i32_27 dim 1 : vector<32x16xf32>, i32 -> vector<32x16xf32>
    %cst_28 = arith.constant 0.000000e+00 : f32
    %74 = vector.shape_cast %36 : vector<1x16xi1> to vector<1x16xi1>
    %75 = vector.broadcast %74 : vector<1x16xi1> to vector<32x16xi1>
    %76 = vector.broadcast %cst_28 : f32 to vector<32x16xf32>
    %77 = arith.select %75, %73, %76 : vector<32x16xi1>, vector<32x16xf32>
    %78 = arith.addf %71, %77 : vector<32x16xf32>
    %cst_29 = arith.constant 0.000000e+00 : f32
    %79 = vector.broadcast %cst_29 : f32 to vector<32x16xf32>
    %80 = arith.maximumf %78, %79 : vector<32x16xf32>
    %c0_30 = arith.constant 0 : index
    %c0_31 = arith.constant 0 : index
    %81 = vector.load %arg6[%c0_30, %c0_31] : memref<1x32xf32, #tpu.memory_space<vmem>>, vector<1x32xf32>
    %cst_32 = arith.constant dense<0.000000e+00> : vector<1x16xf32>
    %82 = tpu.matmul %81, %80, %cst_32 {dimension_numbers = #tpu.dot_dimension_numbers<[1], [0], [0], [1], [0, 0, 1, 1], [], []>, precision = #tpu.contract_precision<fp32>} : vector<1x32xf32>, vector<32x16xf32>, vector<1x16xf32> -> vector<1x16xf32>
    %c0_33 = arith.constant 0 : index
    %c0_34 = arith.constant 0 : index
    %83 = vector.load %arg7[%c0_33, %c0_34] : memref<1x1xf32, #tpu.memory_space<vmem>>, vector<1x1xf32>
    %84 = vector.broadcast %83 : vector<1x1xf32> to vector<1x16xf32>
    %85 = arith.addf %82, %84 : vector<1x16xf32>
    %c0_35 = arith.constant 0 : index
    %c0_36 = arith.constant 0 : index
    %c0_37 = arith.constant 0 : index
    %86 = vector.load %arg8[%c0_35, %c0_36, %c0_37] : memref<1x1x16xf32, #tpu.memory_space<vmem>>, vector<1x1x16xf32>
    %87 = vector.shape_cast %86 : vector<1x1x16xf32> to vector<1x16xf32>
    %88 = vector.shape_cast %85 : vector<1x16xf32> to vector<1x1x16xf32>
    tpu.vector_store %arg8[%c0_35, %c0_36, %c0_37], %88 {strides = array<i32>} : memref<1x1x16xf32, #tpu.memory_space<vmem>>, vector<1x1x16xf32>,
    return
  }
  func.func @transform_0(%arg0: i32) -> (i32, i32, i32) {
    %c0_i32 = arith.constant 0 : i32
    %c0_i32_0 = arith.constant 0 : i32
    %c0_i32_1 = arith.constant 0 : i32
    return %arg0, %c0_i32, %c0_i32_0 : i32, i32, i32
  }
  func.func @transform_1(%arg0: i32) -> (i32, i32) {
    %c0_i32 = arith.constant 0 : i32
    %c0_i32_0 = arith.constant 0 : i32
    %c0_i32_1 = arith.constant 0 : i32
    return %c0_i32, %c0_i32_0 : i32, i32
  }
  func.func @transform_2(%arg0: i32) -> (i32, i32) {
    %c0_i32 = arith.constant 0 : i32
    %c0_i32_0 = arith.constant 0 : i32
    %c0_i32_1 = arith.constant 0 : i32
    return %c0_i32, %c0_i32_0 : i32, i32
  }
  func.func @transform_3(%arg0: i32) -> (i32, i32) {
    %c0_i32 = arith.constant 0 : i32
    %c0_i32_0 = arith.constant 0 : i32
    %c0_i32_1 = arith.constant 0 : i32
    return %c0_i32, %c0_i32_0 : i32, i32
  }
  func.func @transform_4(%arg0: i32) -> (i32, i32) {
    %c0_i32 = arith.constant 0 : i32
    %c0_i32_0 = arith.constant 0 : i32
    %c0_i32_1 = arith.constant 0 : i32
    return %c0_i32, %c0_i32_0 : i32, i32
  }
  func.func @transform_5(%arg0: i32) -> (i32, i32) {
    %c0_i32 = arith.constant 0 : i32
    %c0_i32_0 = arith.constant 0 : i32
    %c0_i32_1 = arith.constant 0 : i32
    return %c0_i32, %c0_i32_0 : i32, i32
  }
  func.func @transform_6(%arg0: i32) -> (i32, i32) {
    %c0_i32 = arith.constant 0 : i32
    %c0_i32_0 = arith.constant 0 : i32
    %c0_i32_1 = arith.constant 0 : i32
    return %c0_i32, %c0_i32_0 : i32, i32
  }
  func.func @transform_7(%arg0: i32) -> (i32, i32, i32) {
    %c0_i32 = arith.constant 0 : i32
    %c0_i32_0 = arith.constant 0 : i32
    %c0_i32_1 = arith.constant 0 : i32
    return %arg0, %c0_i32, %c0_i32_0 : i32, i32, i32
  }
}

</mosaic_0001>

<bundles_post_ra>
// kernel: lite_tcn_forward.1
= control target key start
LH: loop header
LB: loop body
LE: loop exit
PB: predicated region body
PF: predicated region fallthrough
CT: control target
= control target key end

     0   :  { %s2789_s0 = inlined_call_operand.vmem [shape: f32[2,4,16], index: 0, kind: input, shape index: {}]   ;;  %s2790_s1 = inlined_call_operand.vmem [shape: f32[96,4], index: 1, kind: input, shape index: {}]   ;;  %s2791_s2 = inlined_call_operand.vmem [shape: f32[32,1], index: 2, kind: input, shape index: {}]   ;;  %s2792_s3 = inlined_call_operand.vmem [shape: f32[96,32], index: 3, kind: input, shape index: {}]   ;;  %s2793_s4 = inlined_call_operand.vmem [shape: f32[32,1], index: 4, kind: input, shape index: {}]   ;;  %s2794_s5 = inlined_call_operand.vmem [shape: f32[1,32], index: 5, kind: input, shape index: {}]   ;;  %s2795_s6 = inlined_call_operand.<no memory space> [shape: f32[1,1], index: 6, kind: input, shape index: {}]   ;;  %s2796_s7 = inlined_call_operand.hbm [shape: f32[2,1,16], index: 7, kind: output, shape index: {}]  }
   0x1   :  { %v12_v0 = vstv %s2795_s6 }
   0x2   :  { %13 = vst [vmem:[#allocation2] sm:$0x1] %v12_v0 }
   0x3   :  { %14 = vsyncpa [#allocation4], 0 }
   0x4   :  { %16 = vsyncpa [#allocation4 + $0x1], 0  ;;  %s2104_s26 = smov 0   ;;  %s2106_s27 = smov 0  }
   0x5   :  { %s2108_s28 = smov 0   ;;  %s2110_s29 = smov 0  }
   0x6 LB: > { %s2125_s6 = sadd.s32 4294967295, %s2055_s29   ;;  %s1940_s30 = sadd.s32 4294967294, %s2055_s29   ;;  %s2055_s29 = sphi %s2110_s29, %s2802_s29   ;;  %s2051_s28 = sphi %s2108_s28, %s2801_s28   ;;  %s2047_s27 = sphi %s2106_s27, %s2800_s27   ;;  %s2043_s26 = sphi %s2104_s26, %s2799_s26  }
   0x7   : > { %s2129_s8 = sadd.s32 1, %s2055_s29   ;;  %s181_s9 = sadd.s32 1, %s2051_s28 }
   0x8   : > { %s178_s10 = ssub.s32 %s2055_s29, %s2129_s8  ;;  %p191_p0 = scmp.ne.s32.totalorder %s2051_s28, %s2047_s27 }
   0x9   : > { %p179_p1 = scmp.eq.s32.totalorder %s178_s10, 0  ;;  %p192_p2 = scmp.eq.s32.totalorder %s2125_s6, 1 }
   0xa   : > { %p197_p3 = scmp.ne.s32.totalorder %s2047_s27, %s2043_s26  ;;  %p198_p4 = scmp.eq.s32.totalorder %s1940_s30, 1 }
   0xb   : > { %s2140_s11 = scalar_select %p179_p1, %s2051_s28, %s181_s9  }
   0xc   : > { %p2142_p5 = por %p192_p2, %p191_p0  ;;  %p2146_p6 = por %p198_p4, %p197_p3 }
   0xd   : > { %p1943_p7 = scmp.ge.s32.totalorder %s2055_s29, 1  ;;  %p241_p8 = scmp.lt.s32.totalorder %s2055_s29, 3 }
   0xf   : > { %p242_p9 = pnand %p1943_p7, %p241_p8 }
  0x10   : > { %p271_p10 = scmp.lt.s32.totalorder (!%p242_p9), %s2125_s6, 1  ;;  %s2057_s10 = smov (!%p242_p9), 16  }
  0x11   : > { %245 = sbr.rel (%p242_p9) target bundleno = 1552 (0x610), region = 48  ;;  %s2059_s14 = smov (!%p242_p9), 113  }
  0x12   : > { %s2060_s23 = smov (!%p242_p9), 127   ;;  %s2013_s17 = scalar_lea.hbm (!%p242_p9), %s2796_s7, 2 }
  0x16   : > { %v298_v1 = vld [vmem:[%s2790_s1] sm:$0xff]  ;;  %vm310_vm0 = vcmask 31744   ;;  %v299_v2 = vld [vmem:[%s2790_s1 + $0x8] sm:$0xff]  ;;  %s272_s18 = scalar_select %p271_p10, %s2125_s6, 1  ;;  %v300_v7 = vld [vmem:[%s2790_s1 + $0x10] sm:$0xff]  ;;  %vm347_vm1 = vcmask 1043456  }
  0x17   : > { %v312_v3 = vsel %vm310_vm0, %v298_v1, 0  ;;  %v315_v4 = vsel %vm310_vm0, %v299_v2, 0  ;;  %v318_v10 = vsel %vm310_vm0, %v300_v7, 0  ;;  %v301_v20 = vld [vmem:[%s2790_s1 + $0x18] sm:$0xff]  ;;  %v302_v30 = vld [vmem:[%s2790_s1 + $0x20] sm:$0xff]  ;;  %v303_v37 = vld [vmem:[%s2790_s1 + $0x28] sm:$0xff] }
  0x18   : > { %v2162_v5 = vand.u32 4294901760, %v312_v3  ;;  %v2164_v6 = vand.u32 4294901760, %v315_v4  ;;  %s1944_s21 = sshll.u32 %s272_s18, 2  ;;  %v2175_v17 = vand.u32 4294901760, %v318_v10  ;;  %v321_v24 = vsel %vm310_vm0, %v301_v20, 0  ;;  %v304_v44 = vld [vmem:[%s2790_s1 + $0x30] sm:$0xff] }
  0x19   : > { %s274_s24 = scalar_lea.vmem %s2789_s0, %s1944_s21  ;;  %v2182_v29 = vand.u32 4294901760, %v321_v24  ;;  %v324_v33 = vsel %vm310_vm0, %v302_v30, 0  ;;  %v327_v40 = vsel %vm310_vm0, %v303_v37, 0  ;;  %v330_v47 = vsel %vm310_vm0, %v304_v44, 0  ;;  %v305_v51 = vld [vmem:[%s2790_s1 + $0x38] sm:$0xff]  ;;  %v306_v58 = vld [vmem:[%s2790_s1 + $0x40] sm:$0xff]  ;;  %s1881_s21 = scalar_lea.hbm %s2796_s7, %s2125_s6 }
  0x1a   : > { %v369_v8 = vsub.f32 %v312_v3, %v2162_v5  ;;  %v377_v9 = vsub.f32 %v315_v4, %v2164_v6  ;;  %v275_v11 = vld [vmem:[%s274_s24] sm:$0xf]  ;;  %v385_v23 = vsub.f32 %v318_v10, %v2175_v17  ;;  %v2190_v36 = vand.u32 4294901760, %v324_v33  ;;  %v307_v1 = vld [vmem:[%s2790_s1 + $0x48] sm:$0xff]  ;;  %v308_v10 = vld [vmem:[%s2790_s1 + $0x50] sm:$0xff]  ;;  %s1885_s25 = sshll.u32 %s1881_s21, 4  ;;  %s1886_s25 = int_to_ptr.hbm [resolvable:$true] %s1885_s25 }
  0x1b   : > { %v349_v13 = vsel %vm347_vm1, %v275_v11, 0  ;;  %v393_v32 = vsub.f32 %v321_v24, %v2182_v29  ;;  %v2198_v43 = vand.u32 4294901760, %v327_v40  ;;  %v2206_v50 = vand.u32 4294901760, %v330_v47  ;;  %s2007_s9 = sshra.s32 %s1886_s25, 4  ;;  %s2008_s9 = int_to_ptr.hbm [resolvable:$true] %s2007_s9 }
  0x1c   : > { %v370_v12 = vand.u32 4294901760, %v369_v8  ;;  %v366_v14 = vand.u32 4294901760, %v349_v13  ;;  %v378_v16 = vand.u32 4294901760, %v377_v9  ;;  %v386_v28 = vand.u32 4294901760, %v385_v23  ;;  %s2009_s15 = scalar_lea.hbm %s2008_s9, 1  ;;  %p2014_p0 = scmp.lt.s32.totalorder %s2008_s9, %s2796_s7 }
  0x1d   : > { %v394_v35 = vand.u32 4294901760, %v393_v32  ;;  %v401_v39 = vsub.f32 %v324_v33, %v2190_v36  ;;  %v409_v46 = vsub.f32 %v327_v40, %v2198_v43  ;;  %v417_v53 = vsub.f32 %v330_v47, %v2206_v50  ;;  %p2010_p11 = scmp.ne.s32.totalorder %s2008_s9, %s2009_s15  ;;  %p2015_p1 = scmp.lt.s32.totalorder %s2013_s17, %s2009_s15 }
  0x1e   : > { %v371_v15 = vsub.f32 %v369_v8, %v370_v12  ;;  %367 = vmatpush.msra.mxu0 %v366_v14  ;;  %v481_v19 = vsub.f32 %v349_v13, %v366_v14  ;;  %630 = vmatpush.msra.mxu3 %v366_v14  ;;  %v379_v22 = vsub.f32 %v377_v9, %v378_v16  ;;  %v333_v54 = vsel %vm310_vm0, %v305_v51, 0 }
  0x1f   : > { %634 = vmatmul.f32.vlgmr.msra.gmra.mxu3 %v370_v12  ;;  %v387_v31 = vsub.f32 %v385_v23, %v386_v28  ;;  %v395_v38 = vsub.f32 %v393_v32, %v394_v35  ;;  %v402_v42 = vand.u32 4294901760, %v401_v39  ;;  %v410_v49 = vand.u32 4294901760, %v409_v46  ;;  %p2011_p12 = pnand %p2010_p11, %p2142_p5  ;;  %p2016_p2 = por %p2015_p1, %p2014_p0 }
  0x20   : > { %v372_v18 = vand.u32 4294901760, %v371_v15  ;;  %552 = vmatpush.msra.mxu2 %v481_v19  ;;  %v482_v21 = vand.u32 4294901760, %v481_v19  ;;  %v380_v27 = vand.u32 4294901760, %v379_v22  ;;  %v418_v56 = vand.u32 4294901760, %v417_v53 }
  0x21   : > { %555 = vmatmul.f32.vlgmr.msra.gmra.mxu2 %v369_v8  ;;  %v388_v34 = vand.u32 4294901760, %v387_v31  ;;  %v396_v41 = vand.u32 4294901760, %v395_v38  ;;  %v403_v45 = vsub.f32 %v401_v39, %v402_v42  ;;  %v411_v52 = vsub.f32 %v409_v46, %v410_v49  ;;  %p2012_p13 = pneg %p2011_p12 }
  0x22   : > { %373 = vmatmul.f32.vlgmr.msra.gmra.mxu0 %v372_v18  ;;  %v483_v25 = vsub.f32 %v481_v19, %v482_v21  ;;  %v2214_v57 = vand.u32 4294901760, %v333_v54  ;;  %v419_v59 = vsub.f32 %v417_v53, %v418_v56  ;;  %v336_v61 = vsel %vm310_vm0, %v306_v58, 0  ;;  %v309_v18 = vld [vmem:[%s2790_s1 + $0x58] sm:$0xff] }
  0x23   : > { %722 = vmatpush.msrb.mxu0 %v482_v21  ;;  %v404_v48 = vand.u32 4294901760, %v403_v45  ;;  %v412_v55 = vand.u32 4294901760, %v411_v52  ;;  %v2222_v0 = vand.u32 4294901760, %v336_v61  ;;  %v339_v4 = vsel %vm310_vm0, %v307_v1, 0  ;;  %p2017_p3 = pnand %p2016_p2, %p2012_p13 }
  0x24   : > { %v484_v26 = vand.u32 4294901760, %v483_v25  ;;  %v425_v60 = vsub.f32 %v333_v54, %v2214_v57  ;;  %v420_v62 = vand.u32 4294901760, %v419_v59  ;;  %v342_v13 = vsel %vm310_vm0, %v308_v10, 0 }
  0x25   : > { %v433_v3 = vsub.f32 %v336_v61, %v2222_v0  ;;  %v345_v21 = vsel %vm310_vm0, %v309_v18, 0  ;;  %vm866_vm2 = vcmask 1047680   ;;  %vm983_vm5 = vcmask 261120  }
  0x26   : > { %485 = vmatpush.msra.mxu1 %v484_v26  ;;  %v426_v63 = vand.u32 4294901760, %v425_v60  ;;  %v456_v24 = vand.u32 4294901760, %v345_v21  ;;  %vm1870_vm6 = vcmask 122880  }
  0x27   : > { %487 = vmatmul.f32.vlgmr.msra.gmra.mxu1 %v2162_v5  ;;  %640 = vmatmul.f32.gmra.mxu3 %v378_v16  ;;  %v434_v8 = vand.u32 4294901760, %v433_v3  ;;  %v2238_v16 = vand.u32 4294901760, %v342_v13 }
  0x28   : > { %788 = vmatpush.msrb.mxu1 %v366_v14  ;;  %v427_v2 = vsub.f32 %v425_v60, %v426_v63  ;;  %v457_v26 = vsub.f32 %v345_v21, %v456_v24 }
  0x29   : > { %560 = vmatmul.f32.gmra.mxu2 %v377_v9  ;;  %v2230_v9 = vand.u32 4294901760, %v339_v4  ;;  %v435_v11 = vsub.f32 %v433_v3, %v434_v8  ;;  %v449_v20 = vsub.f32 %v342_v13, %v2238_v16 }
  0x2a   : > { %381 = vmatmul.f32.gmra.mxu0 %v380_v27  ;;  %v428_v7 = vand.u32 4294901760, %v427_v2 }
  0x2b   : > { %v441_v12 = vsub.f32 %v339_v4, %v2230_v9  ;;  %v436_v14 = vand.u32 4294901760, %v435_v11 }
  0x2d   : > { %v442_v15 = vand.u32 4294901760, %v441_v12 }
  0x2f   : > { %491 = vmatmul.f32.gmra.mxu1 %v2164_v6  ;;  %646 = vmatmul.f32.gmra.mxu3 %v386_v28  ;;  %v443_v19 = vsub.f32 %v441_v12, %v442_v15  ;;  %v458_v28 = vand.u32 4294901760, %v457_v26 }
  0x31   : > { %565 = vmatmul.f32.gmra.mxu2 %v385_v23  ;;  %v444_v22 = vand.u32 4294901760, %v443_v19  ;;  %v450_v23 = vand.u32 4294901760, %v449_v20  ;;  %v459_v30 = vsub.f32 %v457_v26, %v458_v28 }
  0x32   : > { %389 = vmatmul.f32.gmra.mxu0 %v388_v34 }
  0x33   : > { %v451_v25 = vsub.f32 %v449_v20, %v450_v23  ;;  %v460_v31 = vand.u32 4294901760, %v459_v30 }
  0x35   : > { %v452_v27 = vand.u32 4294901760, %v451_v25 }
  0x37   : > { %495 = vmatmul.f32.gmra.mxu1 %v2175_v17  ;;  %652 = vmatmul.f32.gmra.mxu3 %v394_v35 }
  0x39   : > { %570 = vmatmul.f32.gmra.mxu2 %v393_v32 }
  0x3a   : > { %397 = vmatmul.f32.gmra.mxu0 %v396_v41 }
  0x3f   : > { %499 = vmatmul.f32.gmra.mxu1 %v2182_v29  ;;  %658 = vmatmul.f32.gmra.mxu3 %v402_v42 }
  0x41   : > { %575 = vmatmul.f32.gmra.mxu2 %v401_v39 }
  0x42   : > { %405 = vmatmul.f32.gmra.mxu0 %v404_v48 }
  0x47   : > { %503 = vmatmul.f32.gmra.mxu1 %v2190_v36  ;;  %664 = vmatmul.f32.gmra.mxu3 %v410_v49 }
  0x49   : > { %580 = vmatmul.f32.gmra.mxu2 %v409_v46 }
  0x4a   : > { %413 = vmatmul.f32.gmra.mxu0 %v412_v55 }
  0x4f   : > { %507 = vmatmul.f32.gmra.mxu1 %v2198_v43  ;;  %670 = vmatmul.f32.gmra.mxu3 %v418_v56 }
  0x51   : > { %585 = vmatmul.f32.gmra.mxu2 %v417_v53 }
  0x52   : > { %421 = vmatmul.f32.gmra.mxu0 %v420_v62 }
  0x57   : > { %511 = vmatmul.f32.gmra.mxu1 %v2206_v50  ;;  %676 = vmatmul.f32.gmra.mxu3 %v426_v63 }
  0x59   : > { %590 = vmatmul.f32.gmra.mxu2 %v425_v60 }
  0x5a   : > { %429 = vmatmul.f32.gmra.mxu0 %v428_v7 }
  0x5f   : > { %515 = vmatmul.f32.gmra.mxu1 %v2214_v57  ;;  %682 = vmatmul.f32.gmra.mxu3 %v434_v8 }
  0x61   : > { %595 = vmatmul.f32.gmra.mxu2 %v433_v3 }
  0x62   : > { %437 = vmatmul.f32.gmra.mxu0 %v436_v14 }
  0x67   : > { %519 = vmatmul.f32.gmra.mxu1 %v2222_v0  ;;  %688 = vmatmul.f32.gmra.mxu3 %v442_v15 }
  0x69   : > { %600 = vmatmul.f32.gmra.mxu2 %v441_v12 }
  0x6a   : > { %445 = vmatmul.f32.gmra.mxu0 %v444_v22 }
  0x6f   : > { %523 = vmatmul.f32.gmra.mxu1 %v2230_v9  ;;  %694 = vmatmul.f32.gmra.mxu3 %v450_v23 }
  0x71   : > { %605 = vmatmul.f32.gmra.mxu2 %v449_v20 }
  0x72   : > { %453 = vmatmul.f32.gmra.mxu0 %v452_v27 }
  0x77   : > { %527 = vmatmul.f32.gmra.mxu1 %v2238_v16  ;;  %700 = vmatmul.f32.gmra.mxu3 %v458_v28 }
  0x79   : > { %610 = vmatmul.f32.gmra.mxu2 %v457_v26 }
  0x7a   : > { %461 = vmatmul.f32.gmra.mxu0 %v460_v31 }
  0x7f   : > { %531 = vmatmul.f32.gmra.mxu1 %v456_v24 }
  0x82   : > { %724 = vmatmul.f32.vlgmr.msrb.gmra.mxu0 %v2162_v5 }
  0x87   : > { %790 = vmatmul.f32.vlgmr.msrb.gmra.mxu1 %v2162_v5 }
  0x8a   : > { %728 = vmatmul.f32.gmra.mxu0 %v2164_v6 }
  0x8f   : > { %794 = vmatmul.f32.gmra.mxu1 %v2164_v6 }
  0x92   : > { %732 = vmatmul.f32.gmra.mxu0 %v2175_v17 }
  0x97   : > { %798 = vmatmul.f32.gmra.mxu1 %v2175_v17 }
  0x9a   : > { %736 = vmatmul.f32.gmra.mxu0 %v2182_v29 }
  0x9f   : > { %v2256_v32 = vpop.f32.mrf.mxu0  ;;  %802 = vmatmul.f32.gmra.mxu1 %v2182_v29 }
  0xa2   : > { %740 = vmatmul.f32.gmra.mxu0 %v2190_v36  ;;  %v2293_v48 = vpop.f32.mrf.mxu3 }
  0xa4   : > { %v2260_v33 = vpop.f32.mrf.mxu1  ;;  %v2287_v45 = vpop.f32.mrf.mxu2 }
  0xa7   : > { %v382_v34 = vpop.f32.mrf.mxu0  ;;  %806 = vmatmul.f32.gmra.mxu1 %v2190_v36 }
  0xaa   : > { %744 = vmatmul.f32.gmra.mxu0 %v2198_v43  ;;  %v641_v52 = vpop.f32.mrf.mxu3 }
  0xac   : > { %v492_v5 = vpop.f32.mrf.mxu1  ;;  %v561_v51 = vpop.f32.mrf.mxu2 }
  0xad   : > { %v493_v59 = vadd.f32 %v492_v5, %v382_v34 }
  0xaf   : > { %v390_v6 = vpop.f32.mrf.mxu0  ;;  %810 = vmatmul.f32.gmra.mxu1 %v2198_v43  ;;  %v562_v62 = vadd.f32 %v561_v51, %v493_v59 }
  0xb1   : > { %v642_v1 = vadd.f32 %v641_v52, %v562_v62 }
  0xb2   : > { %748 = vmatmul.f32.gmra.mxu0 %v2206_v50  ;;  %v647_v56 = vpop.f32.mrf.mxu3 }
  0xb4   : > { %v496_v17 = vpop.f32.mrf.mxu1  ;;  %v566_v55 = vpop.f32.mrf.mxu2 }
  0xb5   : > { %v497_v2 = vadd.f32 %v496_v17, %v390_v6 }
  0xb7   : > { %v398_v35 = vpop.f32.mrf.mxu0  ;;  %814 = vmatmul.f32.gmra.mxu1 %v2206_v50  ;;  %v567_v8 = vadd.f32 %v566_v55, %v497_v2 }
  0xb9   : > { %v648_v12 = vadd.f32 %v647_v56, %v567_v8 }
  0xba   : > { %752 = vmatmul.f32.gmra.mxu0 %v2214_v57 }
  0xbc   : > { %v500_v29 = vpop.f32.mrf.mxu1  ;;  %v571_v60 = vpop.f32.mrf.mxu2 }
  0xbd   : > { %v501_v13 = vadd.f32 %v500_v29, %v398_v35 }
  0xbf   : > { %v406_v37 = vpop.f32.mrf.mxu0  ;;  %818 = vmatmul.f32.gmra.mxu1 %v2214_v57 }
  0xc2   : > { %756 = vmatmul.f32.gmra.mxu0 %v2222_v0 }
  0xc4   : > { %v504_v36 = vpop.f32.mrf.mxu1  ;;  %v576_v4 = vpop.f32.mrf.mxu2 }
  0xc5   : > { %v505_v22 = vadd.f32 %v504_v36, %v406_v37 }
  0xc7   : > { %v2270_v38 = vpop.f32.mrf.mxu0  ;;  %822 = vmatmul.f32.gmra.mxu1 %v2222_v0  ;;  %v653_v0 = vpop.f32.mrf.mxu3  ;;  %v577_v26 = vadd.f32 %v576_v4, %v505_v22 }
  0xca   : > { %760 = vmatmul.f32.gmra.mxu0 %v2230_v9 }
  0xcc   : > { %v508_v39 = vpop.f32.mrf.mxu1  ;;  %v581_v20 = vpop.f32.mrf.mxu2 }
  0xcd   : > { %v509_v34 = vadd.f32 %v508_v39, %v2270_v38 }
  0xcf   : > { %v2274_v40 = vpop.f32.mrf.mxu0  ;;  %826 = vmatmul.f32.gmra.mxu1 %v2230_v9  ;;  %v659_v11 = vpop.f32.mrf.mxu3  ;;  %v582_v35 = vadd.f32 %v581_v20, %v509_v34 }
  0xd0   : > { %v660_v31 = vadd.f32 %v659_v11, %v577_v26 }
  0xd2   : > { %764 = vmatmul.f32.gmra.mxu0 %v2238_v16 }
  0xd4   : > { %v2278_v41 = vpop.f32.mrf.mxu1  ;;  %v586_v30 = vpop.f32.mrf.mxu2 }
  0xd5   : > { %v513_v51 = vadd.f32 %v2278_v41, %v2274_v40 }
  0xd7   : > { %v2280_v42 = vpop.f32.mrf.mxu0  ;;  %830 = vmatmul.f32.gmra.mxu1 %v2238_v16  ;;  %v572_v16 = vadd.f32 %v571_v60, %v501_v13  ;;  %v665_v23 = vpop.f32.mrf.mxu3  ;;  %v587_v59 = vadd.f32 %v586_v30, %v513_v51 }
  0xd8   : > { %v666_v36 = vadd.f32 %v665_v23, %v582_v35 }
  0xd9   : > { %v654_v21 = vadd.f32 %v653_v0, %v572_v16 }
  0xda   : > { %768 = vmatmul.f32.gmra.mxu0 %v456_v24 }
  0xdc   : > { %v2283_v43 = vpop.f32.mrf.mxu1  ;;  %v591_v52 = vpop.f32.mrf.mxu2 }
  0xdd   : > { %v517_v39 = vadd.f32 %v2283_v43, %v2280_v42 }
  0xdf   : > { %v2285_v44 = vpop.f32.mrf.mxu0  ;;  %834 = vmatmul.f32.gmra.mxu1 %v456_v24  ;;  %v671_v6 = vpop.f32.mrf.mxu3 }
  0xe0   : > { %v672_v38 = vadd.f32 %v671_v6, %v587_v59 }
  0xe4   : > { %v2289_v46 = vpop.f32.mrf.mxu1 }
  0xe7   : > { %v2291_v47 = vpop.f32.mrf.mxu0 }
  0xec   : > { %v2295_v49 = vpop.f32.mrf.mxu1 }
  0xef   : > { %v2297_v50 = vpop.f32.mrf.mxu0 }
  0xf4   : > { %v2299_v53 = vpop.f32.mrf.mxu1 }
  0xf7   : > { %v2301_v54 = vpop.f32.mrf.mxu0 }
  0xfc   : > { %v2303_v57 = vpop.f32.mrf.mxu1 }
  0xfd   : > { %v533_v30 = vadd.f32 %v2303_v57, %v2301_v54 }
  0xff   : > { %v2305_v58 = vpop.f32.mrf.mxu0 }
 0x104   : > { %v2307_v61 = vpop.f32.mrf.mxu1 }
 0x107   : > { %v729_v63 = vpop.f32.mrf.mxu0 }
 0x108   : > { %v730_v3 = vadd.f32 %v729_v63, %v642_v1  ;;  %v677_v63 = vpop.f32.mrf.mxu3  ;;  %v596_v1 = vpop.f32.mrf.mxu2 }
 0x10c   : > { %v795_v7 = vpop.f32.mrf.mxu1 }
 0x10d   : > { %v2309_v9 = vadd.f32 %v795_v7, %v730_v3  ;;  %v592_v3 = vadd.f32 %v591_v52, %v517_v39  ;;  %v2058_v39 = vmov 0  }
 0x10e   : > { %1991 = vset.pattern.permute.xlu0 %v2058_v39  ;;  %1990 = vset.pattern.permute.xlu1 %v2058_v39 }
 0x10f   : > { %v733_v10 = vpop.f32.mrf.mxu0  ;;  %870 = vrot.lane.b32.xlu1 %v2309_v9, %s2057_s10  ;;  %v678_v41 = vadd.f32 %v677_v63, %v592_v3  ;;  %1992 = vset.pattern.permute.xlu2 %v2058_v39 }
 0x110   : > { %v734_v14 = vadd.f32 %v733_v10, %v648_v12  ;;  %v683_v40 = vpop.f32.mrf.mxu3  ;;  %v601_v13 = vpop.f32.mrf.mxu2 }
 0x114   : > { %v799_v15 = vpop.f32.mrf.mxu1 }
 0x115   : > { %v2313_v18 = vadd.f32 %v799_v15, %v734_v14  ;;  %v525_v14 = vadd.f32 %v2295_v49, %v2291_v47  ;;  %v489_v47 = vadd.f32 %v2260_v33, %v2256_v32  ;;  %v521_v32 = vadd.f32 %v2289_v46, %v2285_v44 }
 0x117   : > { %v737_v19 = vpop.f32.mrf.mxu0  ;;  %873 = vrot.lane.b32.xlu0 %v2313_v18, %s2057_s10  ;;  %v602_v43 = vadd.f32 %v601_v13, %v525_v14  ;;  %v597_v51 = vadd.f32 %v596_v1, %v521_v32  ;;  %v841_v13 = vld [vmem:[%s2791_s2 + $0x18] sm:$0xff]  ;;  %v840_v14 = vld [vmem:[%s2791_s2 + $0x10] sm:$0xff] }
 0x118   : > { %v738_v24 = vadd.f32 %v737_v19, %v654_v21  ;;  %v689_v15 = vpop.f32.mrf.mxu3  ;;  %v606_v19 = vpop.f32.mrf.mxu2  ;;  %v529_v21 = vadd.f32 %v2299_v53, %v2297_v50  ;;  %v557_v53 = vadd.f32 %v2287_v45, %v489_v47 }
 0x119   : > { %v690_v20 = vadd.f32 %v689_v15, %v602_v43  ;;  %v839_v15 = vld [vmem:[%s2791_s2 + $0x8] sm:$0xff]  ;;  %v838_v43 = vld [vmem:[%s2791_s2] sm:$0xff] }
 0x11c   : > { %v803_v25 = vpop.f32.mrf.mxu1 }
 0x11d   : > { %v2317_v27 = vadd.f32 %v803_v25, %v738_v24  ;;  %v607_v25 = vadd.f32 %v606_v19, %v529_v21 }
 0x11f   : > { %v741_v28 = vpop.f32.mrf.mxu0  ;;  %876 = vrot.lane.b32.xlu0 %v2317_v27, %s2057_s10 }
 0x120   : > { %v742_v5 = vadd.f32 %v741_v28, %v660_v31  ;;  %v695_v23 = vpop.f32.mrf.mxu3  ;;  %v611_v31 = vpop.f32.mrf.mxu2 }
 0x121   : > { %v696_v49 = vadd.f32 %v695_v23, %v607_v25 }
 0x124   : > { %v807_v17 = vpop.f32.mrf.mxu1 }
 0x125   : > { %v2322_v29 = vadd.f32 %v807_v17, %v742_v5  ;;  %v612_v5 = vadd.f32 %v611_v31, %v533_v30  ;;  %v276_v30 = vlaneseq }
 0x127   : > { %v745_v37 = vpop.f32.mrf.mxu0  ;;  %v277_v31 = vand.u32 127, %v276_v30 }
 0x128   : > { %v746_v55 = vadd.f32 %v745_v37, %v666_v36  ;;  %v701_v17 = vpop.f32.mrf.mxu3  ;;  %v636_v37 = vadd.f32 %v2293_v48, %v557_v53  ;;  %v684_v48 = vadd.f32 %v683_v40, %v597_v51 }
 0x129   : > { %v702_v33 = vadd.f32 %v701_v17, %v612_v5 }
 0x12a   : > { %v726_v54 = vadd.f32 %v2305_v58, %v636_v37 }
 0x12c   : > { %v811_v56 = vpop.f32.mrf.mxu1  ;;  %v2356_v45 = vadd.f32 %v2307_v61, %v726_v54 }
 0x12d   : > { %v2326_v60 = vadd.f32 %v811_v56, %v746_v55 }
 0x12f   : > { %v749_v62 = vpop.f32.mrf.mxu0 }
 0x130   : > { %v750_v0 = vadd.f32 %v749_v62, %v672_v38 }
 0x134   : > { %v815_v2 = vpop.f32.mrf.mxu1 }
 0x135   : > { %v2330_v4 = vadd.f32 %v815_v2, %v750_v0 }
 0x137   : > { %v753_v7 = vpop.f32.mrf.mxu0 }
 0x138   : > { %v754_v8 = vadd.f32 %v753_v7, %v678_v41 }
 0x13c   : > { %v819_v10 = vpop.f32.mrf.mxu1 }
 0x13d   : > { %v2332_v11 = vadd.f32 %v819_v10, %v754_v8 }
 0x13f   : > { %v757_v12 = vpop.f32.mrf.mxu0 }
 0x140   : > { %v758_v55 = vadd.f32 %v757_v12, %v684_v48 }
 0x144   : > { %v823_v42 = vpop.f32.mrf.mxu1 }
 0x145   : > { %v824_v44 = vadd.f32 %v823_v42, %v758_v55 }
 0x147   : > { %v761_v16 = vpop.f32.mrf.mxu0 }
 0x148   : > { %v762_v22 = vadd.f32 %v761_v16, %v690_v20 }
 0x14c   : > { %v827_v24 = vpop.f32.mrf.mxu1 }
 0x14d   : > { %v2338_v26 = vadd.f32 %v827_v24, %v762_v22 }
 0x14f   : > { %v765_v28 = vpop.f32.mrf.mxu0  ;;  %920 = vrot.lane.b32.xlu0 %v2338_v26, %s2057_s10 }
 0x150   : > { %v766_v34 = vadd.f32 %v765_v28, %v696_v49 }
 0x154   : > { %v831_v50 = vpop.f32.mrf.mxu1 }
 0x155   : > { %v2347_v6 = vadd.f32 %v831_v50, %v766_v34  ;;  %v282_v50 = vand.u32 15, %v277_v31 }
 0x157   : > { %923 = vrot.lane.b32.xlu2 %v2347_v6, %s2057_s10  ;;  %v769_v35 = vpop.f32.mrf.mxu0  ;;  %v2425_v53 = vadd.s32 4294967295, %v282_v50 }
 0x158   : > { %v770_v57 = vadd.f32 %v769_v35, %v702_v33  ;;  %v2427_v35 = vadd.s32 1, %v282_v50 }
 0x159   : > { %vm291_vm3 = vcmp.ge.s32.totalorder %v2425_v53, 0 }
 0x15a   : > { %vm296_vm4 = vcmp.le.s32.totalorder %v2427_v35, 15 }
 0x15c   : > { %v835_v36 = vpop.f32.mrf.mxu1 }
 0x15d   : > { %v2358_v52 = vadd.f32 %v835_v36, %v770_v57 }
 0x15f   : > { %867 = vrot.lane.b32.xlu2 %v2356_v45, %s2057_s10  ;;  %926 = vrot.lane.b32.xlu1 %v2358_v52, %s2057_s10 }
 0x167   : > { %917 = vrot.lane.b32.xlu1 %v824_v44, %s2057_s10 }
 0x181   : > { %v871_v46 = vpop.permute.xlu1 %870 }
 0x182   : > { %v872_v58 = vsel %vm866_vm2, %v871_v46, %v2309_v9 }
 0x183   : > { %881 = vrot.lane.b32.xlu2 %v872_v58, %s2057_s10 }
 0x189   : > { %v874_v61 = vpop.permute.xlu0 %873 }
 0x18a   : > { %v875_v56 = vsel %vm866_vm2, %v874_v61, %v2313_v18 }
 0x18b   : > { %883 = vrot.lane.b32.xlu0 %v875_v56, %s2057_s10 }
 0x191   : > { %v877_v59 = vpop.permute.xlu0 %876 }
 0x192   : > { %v878_v62 = vsel %vm866_vm2, %v877_v59, %v2317_v27 }
 0x193   : > { %885 = vrot.lane.b32.xlu2 %v878_v62, %s2057_s10 }
 0x1b1   : > { %v924_v63 = vpop.permute.xlu2 %923 }
 0x1b2   : > { %v925_v38 = vsel %vm866_vm2, %v924_v63, %v2347_v6 }
 0x1b3   : > { %933 = vrot.lane.b32.xlu0 %v925_v38, %s2057_s10 }
 0x1b9   : > { %v868_v7 = vpop.permute.xlu2 %867 }
 0x1ba   : > { %v869_v41 = vsel %vm866_vm2, %v868_v7, %v2356_v45 }
 0x1c1   : > { %v921_v0 = vpop.permute.xlu0 %920 }
 0x1c2   : > { %v922_v1 = vsel %vm866_vm2, %v921_v0, %v2338_v26 }
 0x1c3   : > { %931 = vrot.lane.b32.xlu2 %v922_v1, %s2057_s10 }
 0x1d1   : > { %v927_v2 = vpop.permute.xlu1 %926 }
 0x1d2   : > { %v928_v3 = vsel %vm866_vm2, %v927_v2, %v2358_v52 }
 0x1d3   : > { %935 = vrot.lane.b32.xlu1 %v928_v3, %s2057_s10 }
 0x1d9   : > { %v918_v40 = vpop.permute.xlu1 %917 }
 0x1da   : > { %v919_v8 = vsel %vm866_vm2, %v918_v40, %v824_v44 }
 0x1db   : > { %879 = vrot.lane.b32.xlu1 %v869_v41, %s2057_s10  ;;  %929 = vrot.lane.b32.xlu0 %v919_v8, %s2057_s10 }
 0x1dd   : > { %v882_v10 = vpop.permute.xlu2 %881 }
 0x1de   : > { %v888_v12 = vsel %vm866_vm2, %v882_v10, %v2309_v9 }
 0x1df   : > { %899 = vrot.lane.b32.xlu2 %v888_v12, %s2059_s14 }
 0x1e3   : > { %859 = vperm.xlu1 %1990, %v841_v13   ;;  %854 = vperm.xlu0 %1991, %v840_v14   ;;  %v971_v14 = vld [vmem:[%s2792_s3] sm:$0xff] }
 0x1eb   : > { %849 = vperm.xlu1 %1990, %v839_v15  }
 0x1ed   : > { %v886_v42 = vpop.permute.xlu2 %885 }
 0x1ee   : > { %v890_v9 = vsel %vm866_vm2, %v886_v42, %v2317_v27 }
 0x1ef   : > { %903 = vrot.lane.b32.xlu2 %v890_v9, %s2059_s14  ;;  %v985_v9 = vsel %vm983_vm5, %v971_v14, 0 }
 0x1f3   : > { %844 = vperm.xlu1 %1990, %v838_v43   ;;  %v2475_v43 = vand.u32 4294901760, %v985_v9 }
 0x1fd   : > { %v884_v16 = vpop.permute.xlu0 %883 }
 0x1fe   : > { %v889_v19 = vsel %vm866_vm2, %v884_v16, %v2313_v18  ;;  %v972_v16 = vld [vmem:[%s2792_s3 + $0x8] sm:$0xff] }
 0x1ff   : > { %901 = vrot.lane.b32.xlu1 %v889_v19, %s2059_s14  ;;  %v1041_v19 = vsub.f32 %v985_v9, %v2475_v43  ;;  %v979_v9 = vld [vmem:[%s2792_s3 + $0x40] sm:$0xff] }
 0x21d   : > { %v932_v27 = vpop.permute.xlu2 %931 }
 0x21e   : > { %v938_v22 = vsel %vm866_vm2, %v932_v27, %v2338_v26 }
 0x225   : > { %v934_v20 = vpop.permute.xlu0 %933 }
 0x226   : > { %v939_v21 = vsel %vm866_vm2, %v934_v20, %v2347_v6 }
 0x227   : > { %951 = vrot.lane.b32.xlu0 %v939_v21, %s2060_s23  ;;  %v988_v21 = vsel %vm983_vm5, %v972_v16, 0 }
 0x22f   : > { %949 = vrot.lane.b32.xlu0 %v938_v22, %s2060_s23  ;;  %v1042_v22 = vand.u32 4294901760, %v1041_v19 }
 0x239   : > { %v900_v5 = vpop.permute.xlu2 %899 }
 0x23a   : > { %v910_v55 = vsel %vm291_vm3, %v900_v5, 0.0 }
 0x245   : > { %v936_v23 = vpop.permute.xlu1 %935 }
 0x246   : > { %v940_v24 = vsel %vm866_vm2, %v936_v23, %v2358_v52  ;;  %v2484_v23 = vand.u32 4294901760, %v988_v21 }
 0x247   : > { %953 = vrot.lane.b32.xlu2 %v940_v24, %s2060_s23 }
 0x249   : > { %v904_v33 = vpop.permute.xlu2 %903 }
 0x24d   : > { %v930_v18 = vpop.permute.xlu0 %929  ;;  %v880_v25 = vpop.permute.xlu1 %879 }
 0x24e   : > { %v937_v28 = vsel %vm866_vm2, %v930_v18, %v824_v44  ;;  %v887_v47 = vsel %vm866_vm2, %v880_v25, %v2356_v45  ;;  %v973_v18 = vld [vmem:[%s2792_s3 + $0x10] sm:$0xff] }
 0x24f   : > { %947 = vrot.lane.b32.xlu1 %v937_v28, %s2060_s23  ;;  %897 = vrot.lane.b32.xlu2 %v887_v47, %s2059_s14  ;;  %v991_v31 = vsel %vm983_vm5, %v973_v18, 0 }
 0x255   : > { %v860_v26 = vpop.permute.xlu1 %859  ;;  %v855_v6 = vpop.permute.xlu0 %854 }
 0x256   : > { %v864_v32 = vadd.f32 %v855_v6, %v2330_v4  ;;  %v865_v45 = vadd.f32 %v860_v26, %v2332_v11  ;;  %v912_v4 = vsel %vm291_vm3, %v904_v33, 0.0  ;;  %v1043_v26 = vsub.f32 %v1041_v19, %v1042_v22 }
 0x258   : > { %v916_v44 = vadd.f32 %v912_v4, %v865_v45  ;;  %v1044_v5 = vand.u32 4294901760, %v1043_v26 }
 0x25d   : > { %v850_v49 = vpop.permute.xlu1 %849 }
 0x25e   : > { %v863_v52 = vadd.f32 %v850_v49, %v2326_v60  ;;  %v1049_v49 = vsub.f32 %v988_v21, %v2484_v23 }
 0x260   : > { %v914_v46 = vadd.f32 %v910_v55, %v863_v52  ;;  %v1050_v6 = vand.u32 4294901760, %v1049_v49  ;;  %v975_v55 = vld [vmem:[%s2792_s3 + $0x20] sm:$0xff] }
 0x265   : > { %v2423_v34 = vpop.permute.xlu1 %844 }
 0x266   : > { %v862_v24 = vadd.f32 %v2423_v34, %v2322_v29  ;;  %v974_v34 = vld [vmem:[%s2792_s3 + $0x18] sm:$0xff] }
 0x271   : > { %v902_v17 = vpop.permute.xlu1 %901 }
 0x272   : > { %v911_v37 = vsel %vm291_vm3, %v902_v17, 0.0  ;;  %v2495_v17 = vand.u32 4294901760, %v991_v31 }
 0x273   : > { %v915_v54 = vadd.f32 %v911_v37, %v864_v32  ;;  %v1051_v32 = vsub.f32 %v1049_v49, %v1050_v6 }
 0x274   : > { %v1057_v33 = vsub.f32 %v991_v31, %v2495_v17 }
 0x276   : > { %v1058_v45 = vand.u32 4294901760, %v1057_v33 }
 0x278   : > { %v1059_v4 = vsub.f32 %v1057_v33, %v1058_v45 }
 0x299   : > { %v952_v57 = vpop.permute.xlu0 %951 }
 0x29a   : > { %v961_v36 = vsel %vm296_vm4, %v952_v57, 0.0  ;;  %v994_v57 = vsel %vm983_vm5, %v974_v34, 0 }
 0x29b   : > { %v965_v51 = vadd.f32 %v961_v36, %v915_v54  ;;  %v2502_v52 = vand.u32 4294901760, %v994_v57 }
 0x29d   : > { %v969_v48 = vmax.f32 %v965_v51, 0.0  ;;  %v1052_v51 = vand.u32 4294901760, %v1051_v32 }
 0x29f   : > { %v2442_v58 = vand.u32 4294901760, %v969_v48 }
 0x2a1   : > { %v950_v61 = vpop.permute.xlu0 %949  ;;  %v954_v56 = vpop.permute.xlu2 %953  ;;  %v2449_v39 = vsub.f32 %v969_v48, %v2442_v58 }
 0x2a2   : > { %v960_v59 = vsel %vm296_vm4, %v950_v61, 0.0  ;;  %v962_v11 = vsel %vm296_vm4, %v954_v56, 0.0  ;;  %v1060_v61 = vand.u32 4294901760, %v1059_v4 }
 0x2a3   : > { %v964_v60 = vadd.f32 %v960_v59, %v914_v46  ;;  %v966_v62 = vadd.f32 %v962_v11, %v916_v44  ;;  %v1157_v7 = vand.u32 4294901760, %v2449_v39  ;;  %v1065_v44 = vsub.f32 %v994_v57, %v2502_v52  ;;  %v976_v11 = vld [vmem:[%s2792_s3 + $0x28] sm:$0xff] }
 0x2a4   : > { %v997_v46 = vsel %vm983_vm5, %v975_v55, 0 }
 0x2a5   : > { %v968_v63 = vmax.f32 %v964_v60, 0.0  ;;  %v970_v38 = vmax.f32 %v966_v62, 0.0  ;;  %v1158_v10 = vsub.f32 %v2449_v39, %v1157_v7  ;;  %v1066_v56 = vand.u32 4294901760, %v1065_v44 }
 0x2a6   : > { %v2512_v59 = vand.u32 4294901760, %v997_v46 }
 0x2a7   : > { %v2451_v0 = vand.u32 4294901760, %v968_v63  ;;  %v2453_v1 = vand.u32 4294901760, %v970_v38  ;;  %v1159_v15 = vand.u32 4294901760, %v1158_v10  ;;  %v1067_v60 = vsub.f32 %v1065_v44, %v1066_v56 }
 0x2a8   : > { %v1073_v62 = vsub.f32 %v997_v46, %v2512_v59 }
 0x2a9   : > { %v1150_v2 = vsub.f32 %v970_v38, %v2453_v1  ;;  %1033 = vmatpush.msrb.mxu2 %v2453_v1  ;;  %1320 = vmatpush.msra.mxu1 %v2453_v1  ;;  %v2459_v3 = vsub.f32 %v968_v63, %v2451_v0  ;;  %v898_v20 = vpop.permute.xlu2 %897  ;;  %v1068_v63 = vand.u32 4294901760, %v1067_v60 }
 0x2aa   : > { %v909_v27 = vsel %vm291_vm3, %v898_v20, 0.0  ;;  %v1074_v38 = vand.u32 4294901760, %v1073_v62  ;;  %v1009_v20 = vsel %vm983_vm5, %v979_v9, 0 }
 0x2ab   : > { %1035 = vmatpush.msrb.mxu2 %v2442_v58  ;;  %1236 = vmatpush.msra.mxu0 %v1150_v2  ;;  %v1151_v40 = vand.u32 4294901760, %v1150_v2  ;;  %v1163_v41 = vand.u32 4294901760, %v2459_v3  ;;  %v913_v25 = vadd.f32 %v909_v27, %v862_v24  ;;  %v980_v24 = vld [vmem:[%s2792_s3 + $0x48] sm:$0xff] }
 0x2ac   : > { %1322 = vmatpush.msra.mxu1 %v2442_v58 }
 0x2ad   : > { %1037 = vmatpush.msrb.mxu2 %v2451_v0  ;;  %1239 = vmatpush.msra.mxu0 %v2449_v39  ;;  %v1152_v8 = vsub.f32 %v1150_v2, %v1151_v40  ;;  %v1164_v13 = vsub.f32 %v2459_v3, %v1163_v41 }
 0x2ae   : > { %1324 = vmatpush.msra.mxu1 %v2451_v0 }
 0x2af   : > { %1242 = vmatpush.msra.mxu0 %v2459_v3  ;;  %v1153_v12 = vand.u32 4294901760, %v1152_v8  ;;  %v1165_v42 = vand.u32 4294901760, %v1164_v13  ;;  %v978_v8 = vld [vmem:[%s2792_s3 + $0x38] sm:$0xff] }
 0x2b0   : > { %v1006_v13 = vsel %vm983_vm5, %v978_v8, 0 }
 0x2b1   : > { %1154 = vmatpush.msrb.mxu3 %v1153_v12 }
 0x2b3   : > { %1160 = vmatpush.msrb.mxu3 %v1159_v15 }
 0x2b5   : > { %1166 = vmatpush.msrb.mxu3 %v1165_v42  ;;  %v2537_v42 = vand.u32 4294901760, %v1006_v13 }
 0x2c1   : > { %v948_v28 = vpop.permute.xlu1 %947 }
 0x2c2   : > { %v959_v47 = vsel %vm296_vm4, %v948_v28, 0.0  ;;  %v1012_v28 = vsel %vm983_vm5, %v980_v24, 0 }
 0x2c3   : > { %v963_v30 = vadd.f32 %v959_v47, %v913_v25 }
 0x2c5   : > { %v967_v50 = vmax.f32 %v963_v30, 0.0  ;;  %v981_v30 = vld [vmem:[%s2792_s3 + $0x50] sm:$0xff] }
 0x2c7   : > { %v1038_v29 = vand.u32 4294901760, %v967_v50 }
 0x2c9   : > { %1039 = vmatpush.msrb.mxu2 %v1038_v29  ;;  %1326 = vmatpush.msra.mxu1 %v1038_v29  ;;  %v1168_v37 = vsub.f32 %v967_v50, %v1038_v29 }
 0x2ca   : > { %1045 = vmatmul.f32.vlgmr.msrb.gmra.mxu2 %v1044_v5  ;;  %1330 = vmatmul.f32.vlgmr.msra.gmra.mxu1 %v1042_v22  ;;  %v2545_v22 = vand.u32 4294901760, %v1009_v20  ;;  %v1015_v5 = vsel %vm983_vm5, %v981_v30, 0 }
 0x2cb   : > { %1415 = vmatpush.msra.mxu2 %v1151_v40  ;;  %1245 = vmatpush.msra.mxu0 %v1168_v37  ;;  %v1169_v54 = vand.u32 4294901760, %v1168_v37  ;;  %v2561_v34 = vand.u32 4294901760, %v1015_v5 }
 0x2cc   : > { %1248 = vmatmul.f32.vlgmr.msra.gmra.mxu0 %v1041_v19  ;;  %v1097_v19 = vsub.f32 %v1006_v13, %v2537_v42  ;;  %v1105_v25 = vsub.f32 %v1009_v20, %v2545_v22 }
 0x2cd   : > { %1419 = vmatpush.msra.mxu2 %v1157_v7  ;;  %v1170_v36 = vsub.f32 %v1168_v37, %v1169_v54  ;;  %v982_v37 = vld [vmem:[%s2792_s3 + $0x58] sm:$0xff] }
 0x2ce   : > { %v1098_v27 = vand.u32 4294901760, %v1097_v19  ;;  %v1106_v26 = vand.u32 4294901760, %v1105_v25 }
 0x2cf   : > { %1423 = vmatpush.msra.mxu2 %v1163_v41  ;;  %v1171_v48 = vand.u32 4294901760, %v1170_v36 }
 0x2d0   : > { %v1099_v18 = vsub.f32 %v1097_v19, %v1098_v27  ;;  %v1107_v31 = vsub.f32 %v1105_v25, %v1106_v26 }
 0x2d1   : > { %1427 = vmatpush.msra.mxu2 %v1169_v54  ;;  %1172 = vmatpush.msrb.mxu3 %v1171_v48  ;;  %v1018_v54 = vsel %vm983_vm5, %v982_v37, 0 }
 0x2d2   : > { %1053 = vmatmul.f32.gmra.mxu2 %v1052_v51  ;;  %1174 = vmatmul.f32.vlgmr.msrb.gmra.mxu3 %v2475_v43  ;;  %v1100_v47 = vand.u32 4294901760, %v1099_v18  ;;  %v2569_v51 = vand.u32 4294901760, %v1018_v54 }
 0x2d3   : > { %1490 = vmatpush.msra.mxu3 %v2453_v1  ;;  %1336 = vmatmul.f32.gmra.mxu1 %v1050_v6  ;;  %v1075_v1 = vsub.f32 %v1073_v62, %v1074_v38  ;;  %v1108_v6 = vand.u32 4294901760, %v1107_v31 }
 0x2d4   : > { %1253 = vmatmul.f32.gmra.mxu0 %v1049_v49  ;;  %v2553_v49 = vand.u32 4294901760, %v1012_v28  ;;  %v1129_v48 = vsub.f32 %v1018_v54, %v2569_v51 }
 0x2d5   : > { %1492 = vmatpush.msra.mxu3 %v2442_v58  ;;  %v1000_v58 = vsel %vm983_vm5, %v976_v11, 0  ;;  %v1076_v7 = vand.u32 4294901760, %v1075_v1 }
 0x2d6   : > { %v2521_v39 = vand.u32 4294901760, %v1000_v58  ;;  %v1113_v50 = vsub.f32 %v1012_v28, %v2553_v49  ;;  %v1130_v4 = vand.u32 4294901760, %v1129_v48 }
 0x2d7   : > { %1494 = vmatpush.msra.mxu3 %v2451_v0  ;;  %v977_v0 = vld [vmem:[%s2792_s3 + $0x30] sm:$0xff] }
 0x2d8   : > { %v1081_v2 = vsub.f32 %v1000_v58, %v2521_v39  ;;  %v1003_v3 = vsel %vm983_vm5, %v977_v0, 0 }
 0x2d9   : > { %1496 = vmatpush.msra.mxu3 %v1038_v29  ;;  %v2529_v41 = vand.u32 4294901760, %v1003_v3  ;;  %v1114_v29 = vand.u32 4294901760, %v1113_v50 }
 0x2da   : > { %1061 = vmatmul.f32.gmra.mxu2 %v1060_v61  ;;  %1178 = vmatmul.f32.gmra.mxu3 %v2484_v23  ;;  %v1082_v40 = vand.u32 4294901760, %v1081_v2 }
 0x2db   : > { %1342 = vmatmul.f32.gmra.mxu1 %v1058_v45  ;;  %v1089_v12 = vsub.f32 %v1003_v3, %v2529_v41  ;;  %v1115_v32 = vsub.f32 %v1113_v50, %v1114_v29 }
 0x2dc   : > { %1258 = vmatmul.f32.gmra.mxu0 %v1057_v33  ;;  %v1083_v10 = vsub.f32 %v1081_v2, %v1082_v40  ;;  %v1121_v33 = vsub.f32 %v1015_v5, %v2561_v34 }
 0x2dd   : > { %v1090_v15 = vand.u32 4294901760, %v1089_v12  ;;  %v1116_v57 = vand.u32 4294901760, %v1115_v32 }
 0x2de   : > { %v1084_v14 = vand.u32 4294901760, %v1083_v10  ;;  %v1122_v36 = vand.u32 4294901760, %v1121_v33 }
 0x2df   : > { %v1091_v16 = vsub.f32 %v1089_v12, %v1090_v15 }
 0x2e0   : > { %v1123_v45 = vsub.f32 %v1121_v33, %v1122_v36 }
 0x2e1   : > { %v1092_v21 = vand.u32 4294901760, %v1091_v16 }
 0x2e2   : > { %1069 = vmatmul.f32.gmra.mxu2 %v1068_v63  ;;  %1182 = vmatmul.f32.gmra.mxu3 %v2495_v17  ;;  %v1124_v55 = vand.u32 4294901760, %v1123_v45 }
 0x2e3   : > { %1348 = vmatmul.f32.gmra.mxu1 %v1066_v56 }
 0x2e4   : > { %1263 = vmatmul.f32.gmra.mxu0 %v1065_v44  ;;  %v1131_v44 = vsub.f32 %v1129_v48, %v1130_v4 }
 0x2e6   : > { %v1132_v46 = vand.u32 4294901760, %v1131_v44 }
 0x2ea   : > { %1077 = vmatmul.f32.gmra.mxu2 %v1076_v7  ;;  %1186 = vmatmul.f32.gmra.mxu3 %v2502_v52 }
 0x2eb   : > { %1354 = vmatmul.f32.gmra.mxu1 %v1074_v38 }
 0x2ec   : > { %1268 = vmatmul.f32.gmra.mxu0 %v1073_v62 }
 0x2f2   : > { %1085 = vmatmul.f32.gmra.mxu2 %v1084_v14  ;;  %1190 = vmatmul.f32.gmra.mxu3 %v2512_v59 }
 0x2f3   : > { %1360 = vmatmul.f32.gmra.mxu1 %v1082_v40 }
 0x2f4   : > { %1273 = vmatmul.f32.gmra.mxu0 %v1081_v2 }
 0x2fa   : > { %1093 = vmatmul.f32.gmra.mxu2 %v1092_v21  ;;  %1194 = vmatmul.f32.gmra.mxu3 %v2521_v39 }
 0x2fb   : > { %1366 = vmatmul.f32.gmra.mxu1 %v1090_v15 }
 0x2fc   : > { %1278 = vmatmul.f32.gmra.mxu0 %v1089_v12 }
 0x302   : > { %1101 = vmatmul.f32.gmra.mxu2 %v1100_v47  ;;  %1198 = vmatmul.f32.gmra.mxu3 %v2529_v41 }
 0x303   : > { %1372 = vmatmul.f32.gmra.mxu1 %v1098_v27 }
 0x304   : > { %1283 = vmatmul.f32.gmra.mxu0 %v1097_v19 }
 0x30a   : > { %1109 = vmatmul.f32.gmra.mxu2 %v1108_v6  ;;  %1202 = vmatmul.f32.gmra.mxu3 %v2537_v42 }
 0x30b   : > { %1378 = vmatmul.f32.gmra.mxu1 %v1106_v26 }
 0x30c   : > { %1288 = vmatmul.f32.gmra.mxu0 %v1105_v25 }
 0x312   : > { %1117 = vmatmul.f32.gmra.mxu2 %v1116_v57  ;;  %1206 = vmatmul.f32.gmra.mxu3 %v2545_v22 }
 0x313   : > { %1384 = vmatmul.f32.gmra.mxu1 %v1114_v29 }
 0x314   : > { %1293 = vmatmul.f32.gmra.mxu0 %v1113_v50 }
 0x31a   : > { %1125 = vmatmul.f32.gmra.mxu2 %v1124_v55  ;;  %1210 = vmatmul.f32.gmra.mxu3 %v2553_v49 }
 0x31b   : > { %1390 = vmatmul.f32.gmra.mxu1 %v1122_v36 }
 0x31c   : > { %1298 = vmatmul.f32.gmra.mxu0 %v1121_v33 }
 0x322   : > { %1133 = vmatmul.f32.gmra.mxu2 %v1132_v46  ;;  %1214 = vmatmul.f32.gmra.mxu3 %v2561_v34 }
 0x323   : > { %1396 = vmatmul.f32.gmra.mxu1 %v1130_v4 }
 0x324   : > { %1303 = vmatmul.f32.gmra.mxu0 %v1129_v48 }
 0x32a   : > { %1218 = vmatmul.f32.gmra.mxu3 %v2569_v51  ;;  %1429 = vmatmul.f32.vlgmr.msra.gmra.mxu2 %v2475_v43 }
 0x332   : > { %1433 = vmatmul.f32.gmra.mxu2 %v2484_v23  ;;  %1498 = vmatmul.f32.vlgmr.msra.gmra.mxu3 %v2475_v43 }
 0x33a   : > { %1437 = vmatmul.f32.gmra.mxu2 %v2495_v17  ;;  %1502 = vmatmul.f32.gmra.mxu3 %v2484_v23 }
 0x342   : > { %1441 = vmatmul.f32.gmra.mxu2 %v2502_v52  ;;  %1506 = vmatmul.f32.gmra.mxu3 %v2495_v17 }
 0x347   : > { %v1331_v61 = vpop.f32.mrf.mxu1 }
 0x349   : > { %v1249_v56 = vpop.f32.mrf.mxu0 }
 0x34a   : > { %1445 = vmatmul.f32.gmra.mxu2 %v2512_v59  ;;  %1510 = vmatmul.f32.gmra.mxu3 %v2502_v52 }
 0x34d   : > { %v1046_v11 = vpop.f32.mrf.mxu2 }
 0x350   : > { %v2589_v43 = vpop.f32.mrf.mxu1 }
 0x351   : > { %v2585_v60 = vpop.f32.mrf.mxu0 }
 0x352   : > { %1449 = vmatmul.f32.gmra.mxu2 %v2521_v39  ;;  %1514 = vmatmul.f32.gmra.mxu3 %v2512_v59 }
 0x355   : > { %v1054_v23 = vpop.f32.mrf.mxu2  ;;  %v1175_v62 = vpop.f32.mrf.mxu3 }
 0x356   : > { %v1176_v58 = vadd.f32 %v1175_v62, %v1046_v11 }
 0x358   : > { %v1250_v63 = vadd.f32 %v1249_v56, %v1176_v58  ;;  %v2597_v38 = vpop.f32.mrf.mxu1 }
 0x359   : > { %v2595_v52 = vpop.f32.mrf.mxu0 }
 0x35a   : > { %v2591_v17 = vadd.f32 %v1331_v61, %v1250_v63  ;;  %1453 = vmatmul.f32.gmra.mxu2 %v2529_v41  ;;  %1518 = vmatmul.f32.gmra.mxu3 %v2521_v39 }
 0x35d   : > { %v1062_v0 = vpop.f32.mrf.mxu2  ;;  %v1179_v1 = vpop.f32.mrf.mxu3 }
 0x35e   : > { %v2599_v2 = vadd.f32 %v1179_v1, %v1054_v23 }
 0x360   : > { %v2607_v8 = vpop.f32.mrf.mxu1  ;;  %v1255_v62 = vadd.f32 %v2585_v60, %v2599_v2 }
 0x361   : > { %v2603_v59 = vpop.f32.mrf.mxu0 }
 0x362   : > { %1457 = vmatmul.f32.gmra.mxu2 %v2537_v42  ;;  %1522 = vmatmul.f32.gmra.mxu3 %v2529_v41  ;;  %v1338_v63 = vadd.f32 %v2589_v43, %v1255_v62 }
 0x365   : > { %v1070_v3 = vpop.f32.mrf.mxu2  ;;  %v1183_v7 = vpop.f32.mrf.mxu3 }
 0x366   : > { %v2605_v40 = vadd.f32 %v1183_v7, %v1062_v0 }
 0x368   : > { %v1355_v14 = vpop.f32.mrf.mxu1  ;;  %v1260_v7 = vadd.f32 %v2595_v52, %v2605_v40 }
 0x369   : > { %v1269_v13 = vpop.f32.mrf.mxu0 }
 0x36a   : > { %1461 = vmatmul.f32.gmra.mxu2 %v2545_v22  ;;  %1526 = vmatmul.f32.gmra.mxu3 %v2537_v42 }
 0x36d   : > { %v1078_v39 = vpop.f32.mrf.mxu2  ;;  %v1187_v10 = vpop.f32.mrf.mxu3 }
 0x36e   : > { %v2611_v12 = vadd.f32 %v1187_v10, %v1070_v3 }
 0x370   : > { %v1361_v42 = vpop.f32.mrf.mxu1  ;;  %v1265_v2 = vadd.f32 %v2603_v59, %v2611_v12 }
 0x371   : > { %v1274_v19 = vpop.f32.mrf.mxu0 }
 0x372   : > { %1465 = vmatmul.f32.gmra.mxu2 %v2553_v49  ;;  %1530 = vmatmul.f32.gmra.mxu3 %v2545_v22  ;;  %v1350_v52 = vadd.f32 %v2607_v8, %v1265_v2 }
 0x375   : > { %v1086_v41 = vpop.f32.mrf.mxu2  ;;  %v1191_v15 = vpop.f32.mrf.mxu3 }
 0x376   : > { %v1192_v9 = vadd.f32 %v1191_v15, %v1078_v39 }
 0x378   : > { %v1270_v16 = vadd.f32 %v1269_v13, %v1192_v9  ;;  %v1367_v28 = vpop.f32.mrf.mxu1 }
 0x379   : > { %v1279_v22 = vpop.f32.mrf.mxu0 }
 0x37a   : > { %v1356_v20 = vadd.f32 %v1355_v14, %v1270_v16  ;;  %1469 = vmatmul.f32.gmra.mxu2 %v2561_v34  ;;  %1534 = vmatmul.f32.gmra.mxu3 %v2553_v49 }
 0x37d   : > { %v1094_v21 = vpop.f32.mrf.mxu2  ;;  %v1195_v27 = vpop.f32.mrf.mxu3 }
 0x37e   : > { %v1196_v24 = vadd.f32 %v1195_v27, %v1086_v41 }
 0x380   : > { %v1275_v18 = vadd.f32 %v1274_v19, %v1196_v24  ;;  %v1373_v37 = vpop.f32.mrf.mxu1 }
 0x381   : > { %v1284_v49 = vpop.f32.mrf.mxu0 }
 0x382   : > { %v1362_v25 = vadd.f32 %v1361_v42, %v1275_v18  ;;  %1473 = vmatmul.f32.gmra.mxu2 %v2569_v51  ;;  %1538 = vmatmul.f32.gmra.mxu3 %v2561_v34 }
 0x385   : > { %v1102_v47 = vpop.f32.mrf.mxu2  ;;  %v1199_v26 = vpop.f32.mrf.mxu3 }
 0x386   : > { %v1200_v30 = vadd.f32 %v1199_v26, %v1094_v21 }
 0x388   : > { %v1280_v31 = vadd.f32 %v1279_v22, %v1200_v30 }
 0x389   : > { %v1289_v8 = vpop.f32.mrf.mxu0 }
 0x38a   : > { %v1368_v50 = vadd.f32 %v1367_v28, %v1280_v31  ;;  %1542 = vmatmul.f32.gmra.mxu3 %v2569_v51  ;;  %v1379_v28 = vpop.f32.mrf.mxu1 }
 0x38d   : > { %v1110_v5 = vpop.f32.mrf.mxu2  ;;  %v1203_v6 = vpop.f32.mrf.mxu3 }
 0x38e   : > { %v1204_v29 = vadd.f32 %v1203_v6, %v1102_v47 }
 0x390   : > { %v1285_v32 = vadd.f32 %v1284_v49, %v1204_v29 }
 0x391   : > { %v1294_v31 = vpop.f32.mrf.mxu0 }
 0x392   : > { %v1374_v33 = vadd.f32 %v1373_v37, %v1285_v32 }
 0x395   : > { %v1118_v54 = vpop.f32.mrf.mxu2  ;;  %v1207_v57 = vpop.f32.mrf.mxu3 }
 0x396   : > { %v2620_v36 = vadd.f32 %v1207_v57, %v1110_v5 }
 0x399   : > { %v1299_v29 = vpop.f32.mrf.mxu0 }
 0x39d   : > { %v1126_v34 = vpop.f32.mrf.mxu2  ;;  %v1211_v45 = vpop.f32.mrf.mxu3 }
 0x39e   : > { %v1212_v48 = vadd.f32 %v1211_v45, %v1118_v54 }
 0x3a0   : > { %v1295_v6 = vadd.f32 %v1294_v31, %v1212_v48 }
 0x3a5   : > { %v1134_v55 = vpop.f32.mrf.mxu2  ;;  %v1215_v4 = vpop.f32.mrf.mxu3 }
 0x3a6   : > { %v1216_v44 = vadd.f32 %v1215_v4, %v1126_v34 }
 0x3a8   : > { %v1300_v57 = vadd.f32 %v1299_v29, %v1216_v44 }
 0x3ad   : > { %v1219_v46 = vpop.f32.mrf.mxu3  ;;  %v1430_v61 = vpop.f32.mrf.mxu2 }
 0x3ae   : > { %v2622_v51 = vadd.f32 %v1219_v46, %v1134_v55  ;;  %v1431_v56 = vadd.f32 %v1430_v61, %v2591_v17  ;;  %v1344_v17 = vadd.f32 %v2597_v38, %v1260_v7  ;;  %v1304_v55 = vpop.f32.mrf.mxu0  ;;  %v1290_v61 = vadd.f32 %v1289_v8, %v2620_v36  ;;  %v1549_v8 = vld [vmem:[%s2793_s4 + $0x18] sm:$0xff] }
 0x3b0   : > { %v1305_v48 = vadd.f32 %v1304_v55, %v2622_v51  ;;  %v1380_v44 = vadd.f32 %v1379_v28, %v1290_v61 }
 0x3b5   : > { %v1434_v11 = vpop.f32.mrf.mxu2  ;;  %v1499_v23 = vpop.f32.mrf.mxu3 }
 0x3b6   : > { %v2627_v58 = vadd.f32 %v1499_v23, %v1431_v56  ;;  %v1435_v0 = vadd.f32 %v1434_v11, %v1338_v63 }
 0x3bd   : > { %v1438_v1 = vpop.f32.mrf.mxu2  ;;  %v1503_v3 = vpop.f32.mrf.mxu3 }
 0x3be   : > { %v2632_v39 = vadd.f32 %v1503_v3, %v1435_v0  ;;  %v1439_v10 = vadd.f32 %v1438_v1, %v1344_v17 }
 0x3c0   : > { %1577 = vrot.lane.b32.xlu2 %v2632_v39, %s2057_s10 }
 0x3c5   : > { %v1442_v13 = vpop.f32.mrf.mxu2  ;;  %v1507_v60 = vpop.f32.mrf.mxu3 }
 0x3c6   : > { %v2639_v43 = vadd.f32 %v1507_v60, %v1439_v10  ;;  %v1443_v40 = vadd.f32 %v1442_v13, %v1350_v52 }
 0x3c8   : > { %1580 = vrot.lane.b32.xlu0 %v2639_v43, %s2057_s10 }
 0x3cd   : > { %v1446_v14 = vpop.f32.mrf.mxu2  ;;  %v1511_v41 = vpop.f32.mrf.mxu3 }
 0x3ce   : > { %v1447_v15 = vadd.f32 %v1446_v14, %v1356_v20  ;;  %v2644_v9 = vadd.f32 %v1511_v41, %v1443_v40 }
 0x3d0   : > { %1583 = vrot.lane.b32.xlu2 %v2644_v9, %s2057_s10 }
 0x3d5   : > { %v1450_v38 = vpop.f32.mrf.mxu2  ;;  %v1515_v16 = vpop.f32.mrf.mxu3 }
 0x3d6   : > { %v1451_v19 = vadd.f32 %v1450_v38, %v1362_v25  ;;  %v2648_v59 = vadd.f32 %v1515_v16, %v1447_v15  ;;  %v1385_v25 = vpop.f32.mrf.mxu1 }
 0x3dd   : > { %v1454_v12 = vpop.f32.mrf.mxu2  ;;  %v1519_v42 = vpop.f32.mrf.mxu3 }
 0x3de   : > { %v1455_v21 = vadd.f32 %v1454_v12, %v1368_v50  ;;  %v2650_v27 = vadd.f32 %v1519_v42, %v1451_v19  ;;  %v1386_v50 = vadd.f32 %v1385_v25, %v1295_v6  ;;  %v1391_v32 = vpop.f32.mrf.mxu1  ;;  %v1548_v19 = vld [vmem:[%s2793_s4 + $0x10] sm:$0xff] }
 0x3df   : > { %v1392_v45 = vadd.f32 %v1391_v32, %v1300_v57  ;;  %v1675_v32 = vld [vmem:[#allocation2] sm:$0x1] }
 0x3e5   : > { %v1458_v24 = vpop.f32.mrf.mxu2  ;;  %v1523_v18 = vpop.f32.mrf.mxu3 }
 0x3e6   : > { %v1459_v22 = vadd.f32 %v1458_v24, %v1374_v33  ;;  %v2652_v20 = vadd.f32 %v1523_v18, %v1455_v21  ;;  %v1397_v11 = vpop.f32.mrf.mxu1  ;;  %v1547_v21 = vld [vmem:[%s2793_s4 + $0x8] sm:$0xff]  ;;  %v1546_v18 = vld [vmem:[%s2793_s4] sm:$0xff] }
 0x3e7   : > { %v1398_v62 = vadd.f32 %v1397_v11, %v1305_v48  ;;  %v1674_v11 = vld [vmem:[%s2794_s5] sm:$0x1] }
 0x3ed   : > { %v1462_v47 = vpop.f32.mrf.mxu2  ;;  %v1527_v26 = vpop.f32.mrf.mxu3 }
 0x3ee   : > { %v2654_v30 = vadd.f32 %v1527_v26, %v1459_v22  ;;  %v1463_v63 = vadd.f32 %v1462_v47, %v1380_v44 }
 0x3f5   : > { %v1466_v49 = vpop.f32.mrf.mxu2  ;;  %v1531_v5 = vpop.f32.mrf.mxu3 }
 0x3f6   : > { %v1467_v37 = vadd.f32 %v1466_v49, %v1386_v50  ;;  %v1532_v3 = vadd.f32 %v1531_v5, %v1463_v63 }
 0x3fd   : > { %v1535_v54 = vpop.f32.mrf.mxu3  ;;  %v1470_v33 = vpop.f32.mrf.mxu2 }
 0x3fe   : > { %v2656_v34 = vadd.f32 %v1535_v54, %v1467_v37  ;;  %v1471_v4 = vadd.f32 %v1470_v33, %v1392_v45 }
 0x400   : > { %1625 = vrot.lane.b32.xlu2 %v2656_v34, %s2057_s10 }
 0x405   : > { %v1539_v46 = vpop.f32.mrf.mxu3  ;;  %v1474_v23 = vpop.f32.mrf.mxu2 }
 0x406   : > { %v1540_v56 = vadd.f32 %v1539_v46, %v1471_v4  ;;  %v1475_v0 = vadd.f32 %v1474_v23, %v1398_v62  ;;  %v1683_v62 = vsel %vm983_vm5, %v1674_v11, 0 }
 0x408   : > { %1628 = vrot.lane.b32.xlu0 %v1540_v56, %s2057_s10 }
 0x40d   : > { %v1543_v1 = vpop.f32.mrf.mxu3 }
 0x40e   : > { %v1544_v7 = vadd.f32 %v1543_v1, %v1475_v0 }
 0x410   : > { %1622 = vrot.lane.b32.xlu0 %v1532_v3, %s2057_s10  ;;  %1631 = vrot.lane.b32.xlu1 %v1544_v7, %s2057_s10 }
 0x418   : > { %1574 = vrot.lane.b32.xlu1 %v2627_v58, %s2057_s10 }
 0x41a   : > { %v1578_v36 = vpop.permute.xlu2 %1577 }
 0x41b   : > { %v1579_v51 = vsel %vm866_vm2, %v1578_v36, %v2632_v39 }
 0x420   : > { %1588 = vrot.lane.b32.xlu1 %v1579_v51, %s2057_s10 }
 0x42a   : > { %v1584_v17 = vpop.permute.xlu2 %1583 }
 0x42b   : > { %v1585_v10 = vsel %vm866_vm2, %v1584_v17, %v2644_v9 }
 0x42c   : > { %1592 = vrot.lane.b32.xlu1 %v1585_v10, %s2057_s10 }
 0x43a   : > { %v1581_v13 = vpop.permute.xlu0 %1580 }
 0x43b   : > { %v1582_v60 = vsel %vm866_vm2, %v1581_v13, %v2639_v43 }
 0x43c   : > { %1590 = vrot.lane.b32.xlu2 %v1582_v60, %s2057_s10 }
 0x45a   : > { %v1626_v2 = vpop.permute.xlu2 %1625 }
 0x45b   : > { %v1627_v52 = vsel %vm866_vm2, %v1626_v2, %v2656_v34 }
 0x45c   : > { %1636 = vrot.lane.b32.xlu1 %v1627_v52, %s2057_s10 }
 0x47a   : > { %v1629_v40 = vpop.permute.xlu0 %1628 }
 0x47b   : > { %v1630_v14 = vsel %vm866_vm2, %v1629_v40, %v1540_v56 }
 0x47c   : > { %1638 = vrot.lane.b32.xlu2 %v1630_v14, %s2057_s10 }
 0x482   : > { %v1623_v41 = vpop.permute.xlu0 %1622  ;;  %v1632_v15 = vpop.permute.xlu1 %1631 }
 0x483   : > { %v1624_v38 = vsel %vm866_vm2, %v1623_v41, %v1532_v3  ;;  %v1633_v16 = vsel %vm866_vm2, %v1632_v15, %v1544_v7 }
 0x484   : > { %1634 = vrot.lane.b32.xlu2 %v1624_v38, %s2057_s10  ;;  %1640 = vrot.lane.b32.xlu0 %v1633_v16, %s2057_s10 }
 0x48a   : > { %v1575_v12 = vpop.permute.xlu1 %1574 }
 0x48b   : > { %v1576_v42 = vsel %vm866_vm2, %v1575_v12, %v2627_v58 }
 0x48c   : > { %1562 = vperm.xlu2 %1992, %v1548_v19   ;;  %1586 = vrot.lane.b32.xlu0 %v1576_v42, %s2057_s10 }
 0x492   : > { %v1589_v24 = vpop.permute.xlu1 %1588 }
 0x493   : > { %v1595_v22 = vsel %vm866_vm2, %v1589_v24, %v2632_v39 }
 0x494   : > { %1557 = vperm.xlu2 %1992, %v1547_v21   ;;  %1567 = vperm.xlu0 %1991, %v1549_v8  }
 0x496   : > { %v1591_v26 = vpop.permute.xlu2 %1590 }
 0x497   : > { %v1596_v31 = vsel %vm866_vm2, %v1591_v26, %v2639_v43 }
 0x49c   : > { %1552 = vperm.xlu2 %1992, %v1546_v18   ;;  %1604 = vrot.lane.b32.xlu0 %v1595_v22, %s2059_s14 }
 0x49e   : > { %v1593_v28 = vpop.permute.xlu1 %1592 }
 0x49f   : > { %v1597_v47 = vsel %vm866_vm2, %v1593_v28, %v2644_v9 }
 0x4a0   : > { %1608 = vrot.lane.b32.xlu1 %v1597_v47, %s2059_s14 }
 0x4a4   : > { %1606 = vrot.lane.b32.xlu0 %v1596_v31, %s2059_s14 }
 0x4ce   : > { %v1637_v29 = vpop.permute.xlu1 %1636 }
 0x4cf   : > { %v1643_v37 = vsel %vm866_vm2, %v1637_v29, %v2656_v34 }
 0x4d6   : > { %v1639_v25 = vpop.permute.xlu2 %1638 }
 0x4d7   : > { %v1644_v49 = vsel %vm866_vm2, %v1639_v25, %v1540_v56 }
 0x4d8   : > { %1654 = vrot.lane.b32.xlu1 %v1644_v49, %s2060_s23 }
 0x4de   : > { %v1635_v39 = vpop.permute.xlu2 %1634 }
 0x4df   : > { %v1642_v5 = vsel %vm866_vm2, %v1635_v39, %v1532_v3 }
 0x4e0   : > { %1650 = vrot.lane.b32.xlu2 %v1642_v5, %s2060_s23 }
 0x4e6   : > { %v1563_v45 = vpop.permute.xlu2 %1562 }
 0x4ee   : > { %v1558_v61 = vpop.permute.xlu2 %1557 }
 0x4f6   : > { %v1641_v6 = vpop.permute.xlu0 %1640  ;;  %v1553_v0 = vpop.permute.xlu2 %1552 }
 0x4f7   : > { %v1645_v9 = vsel %vm866_vm2, %v1641_v6, %v1544_v7  ;;  %v2735_v7 = vand.u32 4294901760, %v1683_v62  ;;  %v1570_v14 = vadd.f32 %v1553_v0, %v2648_v59 }
 0x4f8   : > { %1656 = vrot.lane.b32.xlu1 %v1645_v9, %s2060_s23 }
 0x4f9   : > { %v1706_v13 = vsub.f32 %v1683_v62, %v2735_v7 }
 0x4fb   : > { %v1707_v19 = vand.u32 4294901760, %v1706_v13 }
 0x4fd   : > { %v1708_v28 = vsub.f32 %v1706_v13, %v1707_v19 }
 0x4fe   : > { %v1587_v50 = vpop.permute.xlu0 %1586 }
 0x4ff   : > { %v1594_v43 = vsel %vm866_vm2, %v1587_v50, %v2627_v58  ;;  %v1572_v58 = vadd.f32 %v1563_v45, %v2652_v20  ;;  %v1709_v5 = vand.u32 4294901760, %v1708_v28 }
 0x500   : > { %1602 = vrot.lane.b32.xlu0 %v1594_v43, %s2059_s14  ;;  %1652 = vrot.lane.b32.xlu1 %v1643_v37, %s2060_s23  ;;  %s269_s23 = sand.u32 1, %s2047_s27  }
 0x501   : > { %s270_s22 = scalar_lea.vmem [#allocation3], %s269_s23  ;;  %s1873_s30 = scalar_lea.sflag [#allocation4], %s269_s23 }
 0x502   : > { %s1883_s24 = sshll.u32 %s270_s22, 4  ;;  %s1884_s24 = int_to_ptr.vmem [resolvable:$true] %s1883_s24 }
 0x506   : > { %v1568_v54 = vpop.permute.xlu0 %1567 }
 0x507   : > { %v1573_v63 = vadd.f32 %v1568_v54, %v2654_v30  ;;  %v1571_v30 = vadd.f32 %v1558_v61, %v2650_v27 }
 0x508   : > { %1678 = vperm.xlu0 %1991, %v1675_v32  }
 0x50e   : > { %v1605_v57 = vpop.permute.xlu0 %1604 }
 0x50f   : > { %v1615_v60 = vsel %vm291_vm3, %v1605_v57, 0.0 }
 0x510   : > { %v1619_v41 = vadd.f32 %v1615_v60, %v1571_v30 }
 0x512   : > { %v1609_v33 = vpop.permute.xlu1 %1608 }
 0x513   : > { %v1617_v44 = vsel %vm291_vm3, %v1609_v33, 0.0 }
 0x514   : > { %v1621_v1 = vadd.f32 %v1617_v44, %v1573_v63 }
 0x516   : > { %v1607_v55 = vpop.permute.xlu0 %1606 }
 0x517   : > { %v1616_v46 = vsel %vm291_vm3, %v1607_v55, 0.0 }
 0x518   : > { %v1620_v48 = vadd.f32 %v1616_v46, %v1572_v58 }
 0x53a   : > { %v1651_v52 = vpop.permute.xlu2 %1650 }
 0x53b   : > { %v1662_v59 = vsel %vm296_vm4, %v1651_v52, 0.0 }
 0x54a   : > { %v1655_v4 = vpop.permute.xlu1 %1654 }
 0x54b   : > { %v1664_v34 = vsel %vm296_vm4, %v1655_v4, 0.0 }
 0x54c   : > { %v1668_v56 = vadd.f32 %v1664_v34, %v1620_v48 }
 0x54e   : > { %v1672_v23 = vmax.f32 %v1668_v56, 0.0 }
 0x550   : > { %v2733_v20 = vand.u32 4294901760, %v1672_v23 }
 0x552   : > { %v1733_v17 = vsub.f32 %v1672_v23, %v2733_v20 }
 0x554   : > { %v1734_v40 = vand.u32 4294901760, %v1733_v17 }
 0x556   : > { %v1735_v24 = vsub.f32 %v1733_v17, %v1734_v40 }
 0x558   : > { %v1736_v49 = vand.u32 4294901760, %v1735_v24 }
 0x56a   : > { %v1657_v3 = vpop.permute.xlu1 %1656 }
 0x56b   : > { %v1665_v36 = vsel %vm296_vm4, %v1657_v3, 0.0 }
 0x56c   : > { %v1669_v51 = vadd.f32 %v1665_v36, %v1621_v1 }
 0x56e   : > { %v1673_v10 = vmax.f32 %v1669_v51, 0.0 }
 0x570   : > { %v1697_v2 = vand.u32 4294901760, %v1673_v10 }
 0x572   : > { %v1727_v15 = vsub.f32 %v1673_v10, %v1697_v2  ;;  %v1603_v38 = vpop.permute.xlu0 %1602  ;;  %1698 = vmatpush.msrb.mxu0 %v1697_v2  ;;  %1798 = vmatpush.msrb.mxu3 %v1697_v2  ;;  %v1653_v16 = vpop.permute.xlu1 %1652 }
 0x573   : > { %v1614_v12 = vsel %vm291_vm3, %v1603_v38, 0.0  ;;  %v1663_v42 = vsel %vm296_vm4, %v1653_v16, 0.0 }
 0x574   : > { %v1728_v21 = vand.u32 4294901760, %v1727_v15  ;;  %v1618_v27 = vadd.f32 %v1614_v12, %v1570_v14  ;;  %v1667_v8 = vadd.f32 %v1663_v42, %v1619_v41  ;;  %1700 = vmatpush.msrb.mxu0 %v2733_v20  ;;  %1769 = vmatpush.msrb.mxu2 %v1727_v15 }
 0x575   : > { %1800 = vmatpush.msrb.mxu3 %v2733_v20 }
 0x576   : > { %v1666_v18 = vadd.f32 %v1662_v59, %v1618_v27  ;;  %v1671_v22 = vmax.f32 %v1667_v8, 0.0  ;;  %1772 = vmatpush.msrb.mxu2 %v1733_v17  ;;  %v1729_v53 = vsub.f32 %v1727_v15, %v1728_v21 }
 0x578   : > { %v1670_v47 = vmax.f32 %v1666_v18, 0.0  ;;  %v1701_v26 = vand.u32 4294901760, %v1671_v22  ;;  %v1730_v31 = vand.u32 4294901760, %v1729_v53 }
 0x57a   : > { %v1703_v25 = vand.u32 4294901760, %v1670_v47  ;;  %1702 = vmatpush.msrb.mxu0 %v1701_v26  ;;  %1731 = vmatpush.msrb.mxu1 %v1730_v31  ;;  %v1739_v39 = vsub.f32 %v1671_v22, %v1701_v26  ;;  %v1679_v32 = vpop.permute.xlu0 %1678 }
 0x57b   : > { %1802 = vmatpush.msrb.mxu3 %v1701_v26  ;;  %v1681_v57 = vperm.slane %v1679_v32, 0 }
 0x57c   : > { %1704 = vmatpush.msrb.mxu0 %v1703_v25  ;;  %1737 = vmatpush.msrb.mxu1 %v1736_v49  ;;  %v1745_v35 = vsub.f32 %v1670_v47, %v1703_v25  ;;  %v1740_v6 = vand.u32 4294901760, %v1739_v39 }
 0x57d   : > { %1775 = vmatpush.msrb.mxu2 %v1739_v39  ;;  %1804 = vmatpush.msrb.mxu3 %v1703_v25 }
 0x57e   : > { %1710 = vmatmul.f32.vlgmr.msrb.gmra.mxu0 %v1709_v5  ;;  %v1741_v9 = vsub.f32 %v1739_v39, %v1740_v6  ;;  %1808 = vmatmul.f32.vlgmr.msrb.gmra.mxu3 %v1707_v19  ;;  %v1746_v29 = vand.u32 4294901760, %v1745_v35 }
 0x57f   : > { %1827 = vmatpush.msra.mxu0 %v1728_v21  ;;  %1778 = vmatpush.msrb.mxu2 %v1745_v35 }
 0x580   : > { %1781 = vmatmul.f32.vlgmr.msrb.gmra.mxu2 %v1706_v13  ;;  %v1742_v50 = vand.u32 4294901760, %v1741_v9  ;;  %v1747_v43 = vsub.f32 %v1745_v35, %v1746_v29 }
 0x581   : > { %1831 = vmatpush.msra.mxu0 %v1734_v40 }
 0x582   : > { %1743 = vmatpush.msrb.mxu1 %v1742_v50  ;;  %v1748_v37 = vand.u32 4294901760, %v1747_v43 }
 0x583   : > { %1835 = vmatpush.msra.mxu0 %v1740_v6 }
 0x584   : > { %1749 = vmatpush.msrb.mxu1 %v1748_v37 }
 0x585   : > { %1839 = vmatpush.msra.mxu0 %v1746_v29  ;;  %1751 = vmatmul.f32.vlgmr.msrb.gmra.mxu1 %v2735_v7 }
 0x586   : > { %1858 = vmatpush.msra.mxu1 %v1697_v2  ;;  %1841 = vmatmul.f32.vlgmr.msra.gmra.mxu0 %v2735_v7 }
 0x588   : > { %1860 = vmatpush.msra.mxu1 %v2733_v20 }
 0x58a   : > { %1862 = vmatpush.msra.mxu1 %v1701_v26 }
 0x58c   : > { %1864 = vmatpush.msra.mxu1 %v1703_v25 }
 0x58d   : > { %1866 = vmatmul.f32.vlgmr.msra.gmra.mxu1 %v2735_v7 }
 0x5fb   : > { %v1711_v54 = vpop.f32.mrf.mxu0 }
 0x5fc   : > { %v1712_v33 = vadd.f32 %v1711_v54, %v1681_v57 }
 0x601   : > { %v1809_v46 = vpop.f32.mrf.mxu3 }
 0x602   : > { %v1752_v45 = vpop.f32.mrf.mxu1 }
 0x603   : > { %v1753_v55 = vadd.f32 %v1752_v45, %v1712_v33  ;;  %v1782_v4 = vpop.f32.mrf.mxu2  ;;  %v1842_v34 = vpop.f32.mrf.mxu0 }
 0x605   : > { %v1783_v58 = vadd.f32 %v1782_v4, %v1753_v55 }
 0x607   : > { %v1810_v61 = vadd.f32 %v1809_v46, %v1783_v58 }
 0x609   : > { %v1843_v48 = vadd.f32 %v1842_v34, %v1810_v61 }
 0x60a   : > { %v1867_v56 = vpop.f32.mrf.mxu1 }
 0x60b   : > { %v1868_v11 = vadd.f32 %v1867_v56, %v1843_v48 }
 0x60d   : > { %1871 = vst.msk [vmem:[%s270_s22] sm:$0x1] %vm1870_vm6, %v1868_v11 }
 0x60e   : > { %2020 = shalt.err (!%p2017_p3)
}
 0x60f   : > { %1947 = dma.vmem_to_hbm [thread:$0]  (%p2142_p5), %s1884_s24, 16, %s1886_s25, %s1873_s30  }
 0x610 PF: > { %p1953_p4 = scmp.ge.s32.totalorder %s2055_s29, 2  ;;  %s1897_s14 = sand.u32 1, %s2043_s26  }
 0x611   : > { %s1898_s23 = scalar_lea.sflag [#allocation4], %s1897_s14 }
 0x612   : > { %p1950_p7 = pnand %p1953_p4, %p2146_p6 }
 0x614   : > { %p1951_p8 = pneg %p1950_p7 }
 0x616   : > { %2038 = dma.done.wait (%p1951_p8), %s1898_s23, 16  }
 0x617   : > { %2040 = vsyncadd (%p1951_p8), %s1898_s23, 4294967280  ;;  %p19_p9 = scmp.ge.s32.totalorder %s2129_s8, 4   ;;  %s2799_s26 = smov %s2047_s27 }
 0x618   : > { %s2800_s27 = smov %s2051_s28  ;;  %s2801_s28 = smov %s2140_s11 }
 0x619   : > { %s2802_s29 = smov %s2129_s8  ;;  %21 = sbr.rel (!%p19_p9) target bundleno = 6 (0x6), region = 83 }
 0x61e   :  { %1903 = vsyncpa [#allocation4], 1 }
 0x61f   :  { %1905 = vsyncpa [#allocation4 + $0x1], 1 }

</bundles_post_ra>
